<compile_context>
chip_gen: v5e
topology: v5e:2x2
jax: 0.10.0
libtpu: 0.0.40
codegen_flags: <defaults>
</compile_context>

<pallas_src>
import jax
import jax.numpy as jnp
from jax.experimental import pallas as pl
from jax.experimental.pallas import tpu as pltpu


def _im2col(xp_ref, hh, wh):
    """Gather the 9 shifted (hh, wh, C) windows of a zero-padded scratch ref
    and pack them lane-wise into one (hh*wh, 9*C) patch matrix."""
    c = xp_ref.shape[-1]
    pieces = [xp_ref[dy:dy + hh, dx:dx + wh, :]
              for dy in range(3) for dx in range(3)]
    return jnp.concatenate(pieces, axis=-1).reshape(hh * wh, 9 * c)


def _zero_border(xp_ref):
    """Zero only the 1-pixel padding frame (interior is overwritten later)."""
    hp, wp, c = xp_ref.shape
    xp_ref[0:1, :, :] = jnp.zeros((1, wp, c), jnp.float32)
    xp_ref[hp - 1:hp, :, :] = jnp.zeros((1, wp, c), jnp.float32)
    xp_ref[:, 0:1, :] = jnp.zeros((hp, 1, c), jnp.float32)
    xp_ref[:, wp - 1:wp, :] = jnp.zeros((hp, 1, c), jnp.float32)


def down_kernel(x_ref, w1_ref, s1_ref, b1_ref, w2_ref, s2_ref, b2_ref,
                o_ref, xp1, xp2):
    # x_ref : (1, 2*Hh, Wh, 2*Cin) NHWC input, horizontal pool pair folded
    #                              into the lane axis (free wrapper reshape)
    # w1_ref: (9*Cin, C1) bf16     im2col weight slab for conv1
    # w2_ref: (C2, 9*C1)  bf16     channel-major im2col slab for conv2
    # s*/b* : folded BN scale/bias (conv bias included), f32
    # o_ref : (1, C2, Hh*Wh)       channel-major, lane-dense output
    # xp1   : (Hh+2, Wh+2, Cin) f32 zero-padded pooled input  (VMEM scratch)
    # xp2   : (Hh+2, Wh+2, C1)  f32 zero-padded conv1 output  (VMEM scratch)
    hp, wp, cin = xp1.shape
    hh, wh = hp - 2, wp - 2
    c1 = xp2.shape[-1]

    # ---- MaxPool2d(kernel=2, stride=2), all in f32 on the VPU ----
    xb = x_ref[0]                                         # (2*hh, wh, 2*cin)
    xw = jnp.maximum(xb[:, :, :cin], xb[:, :, cin:])      # horizontal pairs
    xw = xw.reshape(hh, 2, wh, cin)
    pooled = jnp.maximum(xw[:, 0], xw[:, 1])              # vertical pairs

    # ---- conv1 (3x3, pad=1) + BN + ReLU : single im2col matmul ----
    _zero_border(xp1)
    xp1[1:1 + hh, 1:1 + wh, :] = pooled
    p1 = _im2col(xp1, hh, wh).astype(jnp.bfloat16)        # (hh*wh, 9*cin)
    y1 = jnp.dot(p1, w1_ref[...], preferred_element_type=jnp.float32)
    y1 = jnp.maximum(y1 * s1_ref[...] + b1_ref[...], 0.0)  # (hh*wh, c1) f32

    # ---- conv2 (3x3, pad=1) + BN + ReLU : single im2col matmul, produced
    #      channel-major so the output store is lane-dense ----
    _zero_border(xp2)
    xp2[1:1 + hh, 1:1 + wh, :] = y1.reshape(hh, wh, c1)
    p2 = _im2col(xp2, hh, wh).astype(jnp.bfloat16)        # (hh*wh, 9*c1)
    y2t = jnp.einsum("ok,mk->om", w2_ref[...], p2,
                     preferred_element_type=jnp.float32)  # (c2, hh*wh)
    y2t = jnp.maximum(y2t * s2_ref[...] + b2_ref[...], 0.0)
    o_ref[0] = y2t


def fold_conv_bn(w_oihw, conv_b, gamma, beta, mean, var, eps=1e-5,
                 channels_major=False):
    """Fold conv bias + BatchNorm (running stats) into per-channel scale/bias
    and repack the 3x3 conv weights as a single im2col slab (bf16 for MXU).

    channels_major=False -> slab (9*Cin, Cout), scale/bias (1, Cout)
    channels_major=True  -> slab (Cout, 9*Cin), scale/bias (Cout, 1)
    """
    scale = gamma / jnp.sqrt(var + eps)
    bias = beta + (conv_b - mean) * scale
    cout, cin = w_oihw.shape[0], w_oihw.shape[1]
    # (O, I, kh, kw) -> (kh, kw, I, O) -> (9*I, O); row index = (3*dy+dx)*I + i
    slab = jnp.transpose(w_oihw, (2, 3, 1, 0)).reshape(9 * cin, cout)
    if channels_major:
        return (slab.T.astype(jnp.bfloat16),
                scale.reshape(cout, 1), bias.reshape(cout, 1))
    return (slab.astype(jnp.bfloat16),
            scale.reshape(1, cout), bias.reshape(1, cout))


def down_forward(x_nchw, kernel_params):
    (w1, s1, b1), (w2, s2, b2) = kernel_params
    N, Cin, H, W = x_nchw.shape
    Hh, Wh = H // 2, W // 2
    C1 = w1.shape[1]
    C2 = w2.shape[0]

    # NCHW -> NHWC (one layout op), then a FREE reshape folding the horizontal
    # 2x2-pool pair into the lane axis: (N, H, Wh, 2*Cin).
    x = jnp.transpose(x_nchw, (0, 2, 3, 1)).reshape(N, H, Wh, 2 * Cin)

    out = pl.pallas_call(
        down_kernel,
        out_shape=jax.ShapeDtypeStruct((N, C2, Hh * Wh), jnp.float32),
        grid_spec=pltpu.PrefetchScalarGridSpec(
            num_scalar_prefetch=0,
            grid=(N,),
            in_specs=[
                pl.BlockSpec((1, H, Wh, 2 * Cin), lambda n: (n, 0, 0, 0)),
                pl.BlockSpec((9 * Cin, C1), lambda n: (0, 0)),
                pl.BlockSpec((1, C1), lambda n: (0, 0)),
                pl.BlockSpec((1, C1), lambda n: (0, 0)),
                pl.BlockSpec((C2, 9 * C1), lambda n: (0, 0)),
                pl.BlockSpec((C2, 1), lambda n: (0, 0)),
                pl.BlockSpec((C2, 1), lambda n: (0, 0)),
            ],
            out_specs=pl.BlockSpec((1, C2, Hh * Wh), lambda n: (n, 0, 0)),
            scratch_shapes=[
                pltpu.VMEM((Hh + 2, Wh + 2, Cin), jnp.float32),
                pltpu.VMEM((Hh + 2, Wh + 2, C1), jnp.float32),
            ],
        ),
        compiler_params=pltpu.CompilerParams(
            dimension_semantics=("parallel",),
            vmem_limit_bytes=32 * 1024 * 1024,
        ),
    )(x, w1, s1, b1, w2, s2, b2)

    # (N, C2, Hh*Wh) -> NCHW is a pure reshape; no output transpose needed.
    return out.reshape(N, C2, Hh, Wh)


# ----------------------- pure-JAX reference (for checking) -------------------
def ref_down(x, raw_params, eps=1e-5):
    (w1, cb1, g1, be1, m1, v1), (w2, cb2, g2, be2, m2, v2) = raw_params
    x = jax.lax.reduce_window(x, -jnp.inf, jax.lax.max,
                              (1, 1, 2, 2), (1, 1, 2, 2), 'VALID')

    def conv_bn_relu(x, w, cb, g, be, m, v):
        y = jax.lax.conv_general_dilated(
            x, w, window_strides=(1, 1), padding=((1, 1), (1, 1)),
            dimension_numbers=('NCHW', 'OIHW', 'NCHW'))
        y = y + cb[None, :, None, None]
        y = (y - m[None, :, None, None]) / jnp.sqrt(v + eps)[None, :, None, None]
        y = y * g[None, :, None, None] + be[None, :, None, None]
        return jnp.maximum(y, 0.0)

    x = conv_bn_relu(x, w1, cb1, g1, be1, m1, v1)
    x = conv_bn_relu(x, w2, cb2, g2, be2, m2, v2)
    return x


def make_raw_params(key, in_ch, out_ch):
    ks = jax.random.split(key, 12)

    def bn(k0, k1, k2, k3, c):
        gamma = 0.5 + jax.random.uniform(k0, (c,), jnp.float32)
        beta = 0.1 * jax.random.normal(k1, (c,), jnp.float32)
        mean = 0.1 * jax.random.normal(k2, (c,), jnp.float32)
        var = 0.5 + jax.random.uniform(k3, (c,), jnp.float32)
        return gamma, beta, mean, var

    w1 = 0.1 * jax.random.normal(ks[0], (out_ch, in_ch, 3, 3), jnp.float32)
    cb1 = 0.1 * jax.random.normal(ks[1], (out_ch,), jnp.float32)
    g1, be1, m1, v1 = bn(ks[2], ks[3], ks[4], ks[5], out_ch)

    w2 = 0.1 * jax.random.normal(ks[6], (out_ch, out_ch, 3, 3), jnp.float32)
    cb2 = 0.1 * jax.random.normal(ks[7], (out_ch,), jnp.float32)
    g2, be2, m2, v2 = bn(ks[8], ks[9], ks[10], ks[11], out_ch)

    return ((w1, cb1, g1, be1, m1, v1), (w2, cb2, g2, be2, m2, v2))


if __name__ == "__main__":
    key = jax.random.PRNGKey(0)
    k_x, k_p = jax.random.split(key)

    N, in_ch, out_ch, H, W = 2, 4, 8, 16, 16
    x = jax.random.normal(k_x, (N, in_ch, H, W), jnp.float32)

    raw = make_raw_params(k_p, in_ch, out_ch)
    kernel_params = (fold_conv_bn(*raw[0]),
                     fold_conv_bn(*raw[1], channels_major=True))

    out = jax.jit(down_forward)(x, kernel_params)
    out = jax.block_until_ready(out)

    ref = jax.block_until_ready(ref_down(x, raw))
    assert out.shape == (N, out_ch, H // 2, W // 2), out.shape
    # bf16 matmul operands (f32 accumulation) -> slightly looser tolerance.
    err = float(jnp.max(jnp.abs(out - ref)))
    assert jnp.allclose(out, ref, atol=3e-2, rtol=3e-2), err

    print("KERNEL_OK")
</pallas_src>

<mosaic_0001>
module attributes {stable_mosaic.version = 11 : i64} {
  func.func @down_kernel(%arg0: i32, %arg1: memref<1x16x8x8xf32, #tpu.memory_space<vmem>>, %arg2: memref<36x8xbf16, #tpu.memory_space<vmem>>, %arg3: memref<1x8xf32, #tpu.memory_space<vmem>>, %arg4: memref<1x8xf32, #tpu.memory_space<vmem>>, %arg5: memref<8x72xbf16, #tpu.memory_space<vmem>>, %arg6: memref<8x1xf32, #tpu.memory_space<vmem>>, %arg7: memref<8x1xf32, #tpu.memory_space<vmem>>, %arg8: memref<1x8x64xf32, #tpu.memory_space<vmem>>, %arg9: memref<10x10x4xf32, #tpu.memory_space<vmem>>, %arg10: memref<10x10x8xf32, #tpu.memory_space<vmem>>) attributes {dimension_semantics = [#tpu.dimension_semantics<parallel>], iteration_bounds = array<i64: 2>, scalar_prefetch = 0 : i64, scratch_operands = 2 : i64, tpu.core_type = #tpu.core_type<tc>, window_params = [{transform_indices = @transform_0, window_bounds = array<i64: 1, 16, 8, 8>}, {pipeline_mode = #tpu.pipeline_mode<synchronous>, transform_indices = @transform_1, window_bounds = array<i64: 36, 8>}, {pipeline_mode = #tpu.pipeline_mode<synchronous>, transform_indices = @transform_2, window_bounds = array<i64: 1, 8>}, {pipeline_mode = #tpu.pipeline_mode<synchronous>, transform_indices = @transform_3, window_bounds = array<i64: 1, 8>}, {pipeline_mode = #tpu.pipeline_mode<synchronous>, transform_indices = @transform_4, window_bounds = array<i64: 8, 72>}, {pipeline_mode = #tpu.pipeline_mode<synchronous>, transform_indices = @transform_5, window_bounds = array<i64: 8, 1>}, {pipeline_mode = #tpu.pipeline_mode<synchronous>, transform_indices = @transform_6, window_bounds = array<i64: 8, 1>}, {transform_indices = @transform_7, window_bounds = array<i64: 1, 8, 64>}]} {
    %c0 = arith.constant 0 : index
    %c0_0 = arith.constant 0 : index
    %c0_1 = arith.constant 0 : index
    %c0_2 = arith.constant 0 : index
    %0 = vector.load %arg1[%c0, %c0_0, %c0_1, %c0_2] : memref<1x16x8x8xf32, #tpu.memory_space<vmem>>, vector<1x16x8x8xf32>
    %1 = vector.shape_cast %0 : vector<1x16x8x8xf32> to vector<16x8x8xf32>
    %2 = vector.extract_strided_slice %1 {offsets = [0, 0, 0], sizes = [16, 8, 4], strides = [1, 1, 1]} : vector<16x8x8xf32> to vector<16x8x4xf32>
    %3 = vector.extract_strided_slice %1 {offsets = [0, 0, 4], sizes = [16, 8, 4], strides = [1, 1, 1]} : vector<16x8x8xf32> to vector<16x8x4xf32>
    %4 = arith.maximumf %2, %3 : vector<16x8x4xf32>
    %5 = vector.shape_cast %4 : vector<16x8x4xf32> to vector<8x2x8x4xf32>
    %6 = vector.extract_strided_slice %5 {offsets = [0, 0, 0, 0], sizes = [8, 1, 8, 4], strides = [1, 1, 1, 1]} : vector<8x2x8x4xf32> to vector<8x1x8x4xf32>
    %7 = vector.shape_cast %6 : vector<8x1x8x4xf32> to vector<8x8x4xf32>
    %8 = vector.extract_strided_slice %5 {offsets = [0, 1, 0, 0], sizes = [8, 1, 8, 4], strides = [1, 1, 1, 1]} : vector<8x2x8x4xf32> to vector<8x1x8x4xf32>
    %9 = vector.shape_cast %8 : vector<8x1x8x4xf32> to vector<8x8x4xf32>
    %10 = arith.maximumf %7, %9 : vector<8x8x4xf32>
    %cst = arith.constant 0.000000e+00 : f32
    %11 = vector.broadcast %cst : f32 to vector<1x10x4xf32>
    %c0_3 = arith.constant 0 : index
    %c0_4 = arith.constant 0 : index
    %c0_5 = arith.constant 0 : index
    %12 = vector.load %arg9[%c0_3, %c0_4, %c0_5] : memref<10x10x4xf32, #tpu.memory_space<vmem>>, vector<1x10x4xf32>
    tpu.vector_store %arg9[%c0_3, %c0_4, %c0_5], %11 {strides = array<i32>} : memref<10x10x4xf32, #tpu.memory_space<vmem>>, vector<1x10x4xf32>,
    %cst_6 = arith.constant 0.000000e+00 : f32
    %13 = vector.broadcast %cst_6 : f32 to vector<1x10x4xf32>
    %c9 = arith.constant 9 : index
    %c0_7 = arith.constant 0 : index
    %c0_8 = arith.constant 0 : index
    %14 = vector.load %arg9[%c9, %c0_7, %c0_8] : memref<10x10x4xf32, #tpu.memory_space<vmem>>, vector<1x10x4xf32>
    tpu.vector_store %arg9[%c9, %c0_7, %c0_8], %13 {strides = array<i32>} : memref<10x10x4xf32, #tpu.memory_space<vmem>>, vector<1x10x4xf32>,
    %cst_9 = arith.constant 0.000000e+00 : f32
    %15 = vector.broadcast %cst_9 : f32 to vector<10x1x4xf32>
    %c0_10 = arith.constant 0 : index
    %c0_11 = arith.constant 0 : index
    %c0_12 = arith.constant 0 : index
    %16 = vector.load %arg9[%c0_10, %c0_11, %c0_12] : memref<10x10x4xf32, #tpu.memory_space<vmem>>, vector<10x1x4xf32>
    tpu.vector_store %arg9[%c0_10, %c0_11, %c0_12], %15 {strides = array<i32>} : memref<10x10x4xf32, #tpu.memory_space<vmem>>, vector<10x1x4xf32>,
    %cst_13 = arith.constant 0.000000e+00 : f32
    %17 = vector.broadcast %cst_13 : f32 to vector<10x1x4xf32>
    %c0_14 = arith.constant 0 : index
    %c9_15 = arith.constant 9 : index
    %c0_16 = arith.constant 0 : index
    %18 = vector.load %arg9[%c0_14, %c9_15, %c0_16] : memref<10x10x4xf32, #tpu.memory_space<vmem>>, vector<10x1x4xf32>
    tpu.vector_store %arg9[%c0_14, %c9_15, %c0_16], %17 {strides = array<i32>} : memref<10x10x4xf32, #tpu.memory_space<vmem>>, vector<10x1x4xf32>,
    %c1 = arith.constant 1 : index
    %c1_17 = arith.constant 1 : index
    %c0_18 = arith.constant 0 : index
    %19 = vector.load %arg9[%c1, %c1_17, %c0_18] : memref<10x10x4xf32, #tpu.memory_space<vmem>>, vector<8x8x4xf32>
    tpu.vector_store %arg9[%c1, %c1_17, %c0_18], %10 {strides = array<i32>} : memref<10x10x4xf32, #tpu.memory_space<vmem>>, vector<8x8x4xf32>,
    %c0_19 = arith.constant 0 : index
    %c0_20 = arith.constant 0 : index
    %c0_21 = arith.constant 0 : index
    %20 = vector.load %arg9[%c0_19, %c0_20, %c0_21] : memref<10x10x4xf32, #tpu.memory_space<vmem>>, vector<8x8x4xf32>
    %c0_22 = arith.constant 0 : index
    %c1_23 = arith.constant 1 : index
    %c0_24 = arith.constant 0 : index
    %21 = vector.load %arg9[%c0_22, %c1_23, %c0_24] : memref<10x10x4xf32, #tpu.memory_space<vmem>>, vector<8x8x4xf32>
    %c0_25 = arith.constant 0 : index
    %c2 = arith.constant 2 : index
    %c0_26 = arith.constant 0 : index
    %22 = vector.load %arg9[%c0_25, %c2, %c0_26] : memref<10x10x4xf32, #tpu.memory_space<vmem>>, vector<8x8x4xf32>
    %c1_27 = arith.constant 1 : index
    %c0_28 = arith.constant 0 : index
    %c0_29 = arith.constant 0 : index
    %23 = vector.load %arg9[%c1_27, %c0_28, %c0_29] : memref<10x10x4xf32, #tpu.memory_space<vmem>>, vector<8x8x4xf32>
    %c1_30 = arith.constant 1 : index
    %c1_31 = arith.constant 1 : index
    %c0_32 = arith.constant 0 : index
    %24 = vector.load %arg9[%c1_30, %c1_31, %c0_32] : memref<10x10x4xf32, #tpu.memory_space<vmem>>, vector<8x8x4xf32>
    %c1_33 = arith.constant 1 : index
    %c2_34 = arith.constant 2 : index
    %c0_35 = arith.constant 0 : index
    %25 = vector.load %arg9[%c1_33, %c2_34, %c0_35] : memref<10x10x4xf32, #tpu.memory_space<vmem>>, vector<8x8x4xf32>
    %c2_36 = arith.constant 2 : index
    %c0_37 = arith.constant 0 : index
    %c0_38 = arith.constant 0 : index
    %26 = vector.load %arg9[%c2_36, %c0_37, %c0_38] : memref<10x10x4xf32, #tpu.memory_space<vmem>>, vector<8x8x4xf32>
    %c2_39 = arith.constant 2 : index
    %c1_40 = arith.constant 1 : index
    %c0_41 = arith.constant 0 : index
    %27 = vector.load %arg9[%c2_39, %c1_40, %c0_41] : memref<10x10x4xf32, #tpu.memory_space<vmem>>, vector<8x8x4xf32>
    %c2_42 = arith.constant 2 : index
    %c2_43 = arith.constant 2 : index
    %c0_44 = arith.constant 0 : index
    %28 = vector.load %arg9[%c2_42, %c2_43, %c0_44] : memref<10x10x4xf32, #tpu.memory_space<vmem>>, vector<8x8x4xf32>
    %29 = tpu.concatenate %20, %21, %22, %23, %24, %25, %26, %27, %28 in 2 : vector<8x8x4xf32>, vector<8x8x4xf32>, vector<8x8x4xf32>, vector<8x8x4xf32>, vector<8x8x4xf32>, vector<8x8x4xf32>, vector<8x8x4xf32>, vector<8x8x4xf32>, vector<8x8x4xf32> -> vector<8x8x36xf32>
    %30 = vector.shape_cast %29 : vector<8x8x36xf32> to vector<64x36xf32>
    %31 = arith.truncf %30 : vector<64x36xf32> to vector<64x36xbf16>
    %c0_45 = arith.constant 0 : index
    %c0_46 = arith.constant 0 : index
    %32 = vector.load %arg2[%c0_45, %c0_46] : memref<36x8xbf16, #tpu.memory_space<vmem>>, vector<36x8xbf16>
    %cst_47 = arith.constant dense<0.000000e+00> : vector<64x8xf32>
    %33 = tpu.matmul %31, %32, %cst_47 {dimension_numbers = #tpu.dot_dimension_numbers<[1], [0], [0], [1], [0, 0, 1, 1], [], []>} : vector<64x36xbf16>, vector<36x8xbf16>, vector<64x8xf32> -> vector<64x8xf32>
    %c0_48 = arith.constant 0 : index
    %c0_49 = arith.constant 0 : index
    %34 = vector.load %arg3[%c0_48, %c0_49] : memref<1x8xf32, #tpu.memory_space<vmem>>, vector<1x8xf32>
    %35 = vector.broadcast %34 : vector<1x8xf32> to vector<64x8xf32>
    %36 = arith.mulf %33, %35 : vector<64x8xf32>
    %c0_50 = arith.constant 0 : index
    %c0_51 = arith.constant 0 : index
    %37 = vector.load %arg4[%c0_50, %c0_51] : memref<1x8xf32, #tpu.memory_space<vmem>>, vector<1x8xf32>
    %38 = vector.broadcast %37 : vector<1x8xf32> to vector<64x8xf32>
    %39 = arith.addf %36, %38 : vector<64x8xf32>
    %cst_52 = arith.constant 0.000000e+00 : f32
    %40 = vector.broadcast %cst_52 : f32 to vector<64x8xf32>
    %41 = arith.maximumf %39, %40 : vector<64x8xf32>
    %cst_53 = arith.constant 0.000000e+00 : f32
    %42 = vector.broadcast %cst_53 : f32 to vector<1x10x8xf32>
    %c0_54 = arith.constant 0 : index
    %c0_55 = arith.constant 0 : index
    %c0_56 = arith.constant 0 : index
    %43 = vector.load %arg10[%c0_54, %c0_55, %c0_56] : memref<10x10x8xf32, #tpu.memory_space<vmem>>, vector<1x10x8xf32>
    tpu.vector_store %arg10[%c0_54, %c0_55, %c0_56], %42 {strides = array<i32>} : memref<10x10x8xf32, #tpu.memory_space<vmem>>, vector<1x10x8xf32>,
    %cst_57 = arith.constant 0.000000e+00 : f32
    %44 = vector.broadcast %cst_57 : f32 to vector<1x10x8xf32>
    %c9_58 = arith.constant 9 : index
    %c0_59 = arith.constant 0 : index
    %c0_60 = arith.constant 0 : index
    %45 = vector.load %arg10[%c9_58, %c0_59, %c0_60] : memref<10x10x8xf32, #tpu.memory_space<vmem>>, vector<1x10x8xf32>
    tpu.vector_store %arg10[%c9_58, %c0_59, %c0_60], %44 {strides = array<i32>} : memref<10x10x8xf32, #tpu.memory_space<vmem>>, vector<1x10x8xf32>,
    %cst_61 = arith.constant 0.000000e+00 : f32
    %46 = vector.broadcast %cst_61 : f32 to vector<10x1x8xf32>
    %c0_62 = arith.constant 0 : index
    %c0_63 = arith.constant 0 : index
    %c0_64 = arith.constant 0 : index
    %47 = vector.load %arg10[%c0_62, %c0_63, %c0_64] : memref<10x10x8xf32, #tpu.memory_space<vmem>>, vector<10x1x8xf32>
    tpu.vector_store %arg10[%c0_62, %c0_63, %c0_64], %46 {strides = array<i32>} : memref<10x10x8xf32, #tpu.memory_space<vmem>>, vector<10x1x8xf32>,
    %cst_65 = arith.constant 0.000000e+00 : f32
    %48 = vector.broadcast %cst_65 : f32 to vector<10x1x8xf32>
    %c0_66 = arith.constant 0 : index
    %c9_67 = arith.constant 9 : index
    %c0_68 = arith.constant 0 : index
    %49 = vector.load %arg10[%c0_66, %c9_67, %c0_68] : memref<10x10x8xf32, #tpu.memory_space<vmem>>, vector<10x1x8xf32>
    tpu.vector_store %arg10[%c0_66, %c9_67, %c0_68], %48 {strides = array<i32>} : memref<10x10x8xf32, #tpu.memory_space<vmem>>, vector<10x1x8xf32>,
    %50 = vector.shape_cast %41 : vector<64x8xf32> to vector<8x8x8xf32>
    %c1_69 = arith.constant 1 : index
    %c1_70 = arith.constant 1 : index
    %c0_71 = arith.constant 0 : index
    %51 = vector.load %arg10[%c1_69, %c1_70, %c0_71] : memref<10x10x8xf32, #tpu.memory_space<vmem>>, vector<8x8x8xf32>
    tpu.vector_store %arg10[%c1_69, %c1_70, %c0_71], %50 {strides = array<i32>} : memref<10x10x8xf32, #tpu.memory_space<vmem>>, vector<8x8x8xf32>,
    %c0_72 = arith.constant 0 : index
    %c0_73 = arith.constant 0 : index
    %c0_74 = arith.constant 0 : index
    %52 = vector.load %arg10[%c0_72, %c0_73, %c0_74] : memref<10x10x8xf32, #tpu.memory_space<vmem>>, vector<8x8x8xf32>
    %c0_75 = arith.constant 0 : index
    %c1_76 = arith.constant 1 : index
    %c0_77 = arith.constant 0 : index
    %53 = vector.load %arg10[%c0_75, %c1_76, %c0_77] : memref<10x10x8xf32, #tpu.memory_space<vmem>>, vector<8x8x8xf32>
    %c0_78 = arith.constant 0 : index
    %c2_79 = arith.constant 2 : index
    %c0_80 = arith.constant 0 : index
    %54 = vector.load %arg10[%c0_78, %c2_79, %c0_80] : memref<10x10x8xf32, #tpu.memory_space<vmem>>, vector<8x8x8xf32>
    %c1_81 = arith.constant 1 : index
    %c0_82 = arith.constant 0 : index
    %c0_83 = arith.constant 0 : index
    %55 = vector.load %arg10[%c1_81, %c0_82, %c0_83] : memref<10x10x8xf32, #tpu.memory_space<vmem>>, vector<8x8x8xf32>
    %c1_84 = arith.constant 1 : index
    %c1_85 = arith.constant 1 : index
    %c0_86 = arith.constant 0 : index
    %56 = vector.load %arg10[%c1_84, %c1_85, %c0_86] : memref<10x10x8xf32, #tpu.memory_space<vmem>>, vector<8x8x8xf32>
    %c1_87 = arith.constant 1 : index
    %c2_88 = arith.constant 2 : index
    %c0_89 = arith.constant 0 : index
    %57 = vector.load %arg10[%c1_87, %c2_88, %c0_89] : memref<10x10x8xf32, #tpu.memory_space<vmem>>, vector<8x8x8xf32>
    %c2_90 = arith.constant 2 : index
    %c0_91 = arith.constant 0 : index
    %c0_92 = arith.constant 0 : index
    %58 = vector.load %arg10[%c2_90, %c0_91, %c0_92] : memref<10x10x8xf32, #tpu.memory_space<vmem>>, vector<8x8x8xf32>
    %c2_93 = arith.constant 2 : index
    %c1_94 = arith.constant 1 : index
    %c0_95 = arith.constant 0 : index
    %59 = vector.load %arg10[%c2_93, %c1_94, %c0_95] : memref<10x10x8xf32, #tpu.memory_space<vmem>>, vector<8x8x8xf32>
    %c2_96 = arith.constant 2 : index
    %c2_97 = arith.constant 2 : index
    %c0_98 = arith.constant 0 : index
    %60 = vector.load %arg10[%c2_96, %c2_97, %c0_98] : memref<10x10x8xf32, #tpu.memory_space<vmem>>, vector<8x8x8xf32>
    %61 = tpu.concatenate %52, %53, %54, %55, %56, %57, %58, %59, %60 in 2 : vector<8x8x8xf32>, vector<8x8x8xf32>, vector<8x8x8xf32>, vector<8x8x8xf32>, vector<8x8x8xf32>, vector<8x8x8xf32>, vector<8x8x8xf32>, vector<8x8x8xf32>, vector<8x8x8xf32> -> vector<8x8x72xf32>
    %62 = vector.shape_cast %61 : vector<8x8x72xf32> to vector<64x72xf32>
    %63 = arith.truncf %62 : vector<64x72xf32> to vector<64x72xbf16>
    %c0_99 = arith.constant 0 : index
    %c0_100 = arith.constant 0 : index
    %64 = vector.load %arg5[%c0_99, %c0_100] : memref<8x72xbf16, #tpu.memory_space<vmem>>, vector<8x72xbf16>
    "tpu.trace_start"() <{level = 10 : i32, message = "ok,mk->om"}> : () -> ()
    %cst_101 = arith.constant dense<0.000000e+00> : vector<8x64xf32>
    %65 = tpu.matmul %64, %63, %cst_101 {dimension_numbers = #tpu.dot_dimension_numbers<[1], [1], [0], [0], [0, 0, 1, 0], [], []>} : vector<8x72xbf16>, vector<64x72xbf16>, vector<8x64xf32> -> vector<8x64xf32>
    "tpu.trace_stop"() : () -> ()
    %c0_102 = arith.constant 0 : index
    %c0_103 = arith.constant 0 : index
    %66 = vector.load %arg6[%c0_102, %c0_103] : memref<8x1xf32, #tpu.memory_space<vmem>>, vector<8x1xf32>
    %67 = vector.broadcast %66 : vector<8x1xf32> to vector<8x64xf32>
    %68 = arith.mulf %65, %67 : vector<8x64xf32>
    %c0_104 = arith.constant 0 : index
    %c0_105 = arith.constant 0 : index
    %69 = vector.load %arg7[%c0_104, %c0_105] : memref<8x1xf32, #tpu.memory_space<vmem>>, vector<8x1xf32>
    %70 = vector.broadcast %69 : vector<8x1xf32> to vector<8x64xf32>
    %71 = arith.addf %68, %70 : vector<8x64xf32>
    %cst_106 = arith.constant 0.000000e+00 : f32
    %72 = vector.broadcast %cst_106 : f32 to vector<8x64xf32>
    %73 = arith.maximumf %71, %72 : vector<8x64xf32>
    %c0_107 = arith.constant 0 : index
    %c0_108 = arith.constant 0 : index
    %c0_109 = arith.constant 0 : index
    %74 = vector.load %arg8[%c0_107, %c0_108, %c0_109] : memref<1x8x64xf32, #tpu.memory_space<vmem>>, vector<1x8x64xf32>
    %75 = vector.shape_cast %74 : vector<1x8x64xf32> to vector<8x64xf32>
    %76 = vector.shape_cast %73 : vector<8x64xf32> to vector<1x8x64xf32>
    tpu.vector_store %arg8[%c0_107, %c0_108, %c0_109], %76 {strides = array<i32>} : memref<1x8x64xf32, #tpu.memory_space<vmem>>, vector<1x8x64xf32>,
    return
  }
  func.func @transform_0(%arg0: i32) -> (i32, i32, i32, i32) {
    %c0_i32 = arith.constant 0 : i32
    %c0_i32_0 = arith.constant 0 : i32
    %c0_i32_1 = arith.constant 0 : i32
    %c0_i32_2 = arith.constant 0 : i32
    return %arg0, %c0_i32, %c0_i32_0, %c0_i32_1 : i32, i32, i32, i32
  }
  func.func @transform_1(%arg0: i32) -> (i32, i32) {
    %c0_i32 = arith.constant 0 : i32
    %c0_i32_0 = arith.constant 0 : i32
    %c0_i32_1 = arith.constant 0 : i32
    return %c0_i32, %c0_i32_0 : i32, i32
  }
  func.func @transform_2(%arg0: i32) -> (i32, i32) {
    %c0_i32 = arith.constant 0 : i32
    %c0_i32_0 = arith.constant 0 : i32
    %c0_i32_1 = arith.constant 0 : i32
    return %c0_i32, %c0_i32_0 : i32, i32
  }
  func.func @transform_3(%arg0: i32) -> (i32, i32) {
    %c0_i32 = arith.constant 0 : i32
    %c0_i32_0 = arith.constant 0 : i32
    %c0_i32_1 = arith.constant 0 : i32
    return %c0_i32, %c0_i32_0 : i32, i32
  }
  func.func @transform_4(%arg0: i32) -> (i32, i32) {
    %c0_i32 = arith.constant 0 : i32
    %c0_i32_0 = arith.constant 0 : i32
    %c0_i32_1 = arith.constant 0 : i32
    return %c0_i32, %c0_i32_0 : i32, i32
  }
  func.func @transform_5(%arg0: i32) -> (i32, i32) {
    %c0_i32 = arith.constant 0 : i32
    %c0_i32_0 = arith.constant 0 : i32
    %c0_i32_1 = arith.constant 0 : i32
    return %c0_i32, %c0_i32_0 : i32, i32
  }
  func.func @transform_6(%arg0: i32) -> (i32, i32) {
    %c0_i32 = arith.constant 0 : i32
    %c0_i32_0 = arith.constant 0 : i32
    %c0_i32_1 = arith.constant 0 : i32
    return %c0_i32, %c0_i32_0 : i32, i32
  }
  func.func @transform_7(%arg0: i32) -> (i32, i32, i32) {
    %c0_i32 = arith.constant 0 : i32
    %c0_i32_0 = arith.constant 0 : i32
    %c0_i32_1 = arith.constant 0 : i32
    return %arg0, %c0_i32, %c0_i32_0 : i32, i32, i32
  }
}

</mosaic_0001>

<bundles_post_ra>
// kernel: down_forward.1
= control target key start
LH: loop header
LB: loop body
LE: loop exit
PB: predicated region body
PF: predicated region fallthrough
CT: control target
= control target key end

     0   :  { %s1896_s24 = smov 0   ;;  %s2492_s0 = inlined_call_operand.vmem [shape: f32[2,16,8,8], index: 0, kind: input, shape index: {}]   ;;  %s2493_s1 = inlined_call_operand.vmem [shape: bf16[36,8], index: 1, kind: input, shape index: {}]   ;;  %s2494_s2 = inlined_call_operand.vmem [shape: f32[1,8], index: 2, kind: input, shape index: {}]   ;;  %s2495_s3 = inlined_call_operand.vmem [shape: f32[1,8], index: 3, kind: input, shape index: {}]   ;;  %s2496_s4 = inlined_call_operand.vmem [shape: bf16[8,72], index: 4, kind: input, shape index: {}]   ;;  %s2497_s5 = inlined_call_operand.vmem [shape: f32[8,1], index: 5, kind: input, shape index: {}]   ;;  %s2498_s6 = inlined_call_operand.vmem [shape: f32[8,1], index: 6, kind: input, shape index: {}]   ;;  %s2499_s7 = inlined_call_operand.vmem [shape: f32[2,8,64], index: 7, kind: output, shape index: {}]  }
   0x1 LB: > { %s1457_s25 = sadd.s32 4294967295, %s1839_s24   ;;  %p1461_p0 = scmp.ge.s32.totalorder %s1839_s24, 1  ;;  %s1839_s24 = sphi %s1896_s24, %s17_s24  }
   0x2   : > { %p237_p1 = scmp.lt.s32.totalorder %s1839_s24, 3 }
   0x4   : > { %p238_p2 = pnand %p1461_p0, %p237_p1 }
   0x5   : > { %p268_p3 = scmp.lt.s32.totalorder (!%p238_p2), %s1457_s25, 1  ;;  %s1841_s30 = smov (!%p238_p2), 124  }
   0x6   : > { %241 = sbr.rel (%p238_p2) target bundleno = 831 (0x33f), region = 48  ;;  %s1843_s8 = smov (!%p238_p2), 12  }
   0x7   : > { %s1844_s9 = smov (!%p238_p2), 4   ;;  %s1845_s10 = smov (!%p238_p2), 8  }
   0x8   : > { %s1846_s11 = smov (!%p238_p2), 24   ;;  %s1847_s12 = smov (!%p238_p2), 16  }
   0x9   : > { %s1848_s13 = smov (!%p238_p2), 20   ;;  %s1849_s14 = smov (!%p238_p2), 28  }
   0xa   : > { %s1850_s15 = smov (!%p238_p2), 32   ;;  %s1851_s28 = smov (!%p238_p2), 40  }
   0xb   : > { %s2501_s25 = smov (!%p268_p3, %s1457_s25), 1  ;;  %vm389_vm0 = vcmask 24576   ;;  %v1842_v17 = vmov 0.0   ;;  %vm382_vm1 = vcmask 31744   ;;  %vm384_vm2 = vcmask 25600  }
   0xc   : > { %s1480_s26 = sshll.u32 %s2501_s25, 7  ;;  %395 = vst.msk [vmem:[#allocation2 + $0x50] sm:$0x1] %vm389_vm0, %v1842_v17  ;;  %vm756_vm3 = vcmask 64512   ;;  %vm856_vm4 = vcmask 1041408   ;;  %vm765_vm5 = vcmask 97280  }
   0xd   : > { %s1910_s29 = scalar_lea.vmem %s2492_s0, %s1480_s26  ;;  %396 = vst.msk [vmem:[#allocation2 + $0x60] sm:$0x1] %vm389_vm0, %v1842_v17  ;;  %vm774_vm6 = vcmask 130048   ;;  %vm783_vm7 = vcmask 162816   ;;  %vm792_vm8 = vcmask 195584   ;;  %vm801_vm9 = vcmask 228352  }
   0xe   : > { %v1913_v0 = vld [vmem:[%s1910_s29 + $0x40] sm:$0xff]  ;;  %v1916_v1 = vld [vmem:[%s1910_s29 + $0x30] sm:$0xff]  ;;  %v1925_v3 = vld [vmem:[%s1910_s29 + $0x48] sm:$0xff]  ;;  %383 = vst.msk [vmem:[#allocation2] sm:$0xff] %vm382_vm1, %v1842_v17  ;;  %vm810_vm10 = vcmask 261120   ;;  %vm843_vm11 = vcmask 293888  }
   0xf   : > { %326 = vrot.lane.b32.xlu1 %v1913_v0, %s1841_s30  ;;  %322 = vrot.lane.b32.xlu0 %v1916_v1, %s1841_s30  ;;  %v288_v2 = vld [vmem:[%s1910_s29 + $0x50] sm:$0xff]  ;;  %v1928_v4 = vld [vmem:[%s1910_s29 + $0x38] sm:$0xff]  ;;  %387 = vst.msk [vmem:[#allocation2 + $0x90] sm:$0xff] %vm382_vm1, %v1842_v17  ;;  %vm927_vm12 = vcmask 57344   ;;  %vm922_vm13 = vcmask 58368   ;;  %vm1318_vm14 = vcmask 326656  }
  0x10   : > { %330 = vrot.lane.b32.xlu2 %v288_v2, %s1841_s30  ;;  %v289_v5 = vld [vmem:[%s1910_s29 + $0x58] sm:$0xff]  ;;  %v1937_v6 = vld [vmem:[%s1910_s29 + $0x68] sm:$0xff]  ;;  %v1940_v7 = vld [vmem:[%s1910_s29 + $0x60] sm:$0xff]  ;;  %391 = vst.msk [vmem:[#allocation2 + $0x10] sm:$0x1] %vm389_vm0, %v1842_v17  ;;  %vm1327_vm15 = vcmask 392192  }
  0x11   : > { %v1943_v8 = vld [vmem:[%s1910_s29] sm:$0xff]  ;;  %v1952_v9 = vld [vmem:[%s1910_s29 + $0x10] sm:$0xff]  ;;  %v1955_v10 = vld [vmem:[%s1910_s29 + $0x8] sm:$0xff]  ;;  %392 = vst.msk [vmem:[#allocation2 + $0x20] sm:$0x1] %vm389_vm0, %v1842_v17 }
  0x12   : > { %v1958_v11 = vld [vmem:[%s1910_s29 + $0x18] sm:$0xff]  ;;  %v1967_v12 = vld [vmem:[%s1910_s29 + $0x28] sm:$0xff]  ;;  %v1970_v13 = vld [vmem:[%s1910_s29 + $0x20] sm:$0xff]  ;;  %393 = vst.msk [vmem:[#allocation2 + $0x30] sm:$0x1] %vm389_vm0, %v1842_v17 }
  0x13   : > { %v1973_v14 = vld [vmem:[%s1910_s29 + $0x70] sm:$0xff]  ;;  %v1982_v15 = vld [vmem:[%s1910_s29 + $0x78] sm:$0xff]  ;;  %394 = vst.msk [vmem:[#allocation2 + $0x40] sm:$0x1] %vm389_vm0, %v1842_v17  ;;  %s1852_s29 = smov 64  }
  0x14   : > { %397 = vst.msk [vmem:[#allocation2 + $0x70] sm:$0x1] %vm389_vm0, %v1842_v17 }
  0x15   : > { %398 = vst.msk [vmem:[#allocation2 + $0x80] sm:$0x1] %vm389_vm0, %v1842_v17 }
  0x16   : > { %401 = vst.msk [vmem:[#allocation2 + $0x19] sm:$0x1] %vm389_vm0, %v1842_v17 }
  0x17   : > { %328 = vrot.lane.b32.xlu1 %v1925_v3, %s1841_s30  ;;  %324 = vrot.lane.b32.xlu0 %v1928_v4, %s1841_s30  ;;  %402 = vst.msk [vmem:[#allocation2 + $0x29] sm:$0x1] %vm389_vm0, %v1842_v17 }
  0x18   : > { %332 = vrot.lane.b32.xlu2 %v289_v5, %s1841_s30  ;;  %403 = vst.msk [vmem:[#allocation2 + $0x39] sm:$0x1] %vm389_vm0, %v1842_v17 }
  0x19   : > { %404 = vst.msk [vmem:[#allocation2 + $0x49] sm:$0x1] %vm389_vm0, %v1842_v17 }
  0x1a   : > { %405 = vst.msk [vmem:[#allocation2 + $0x59] sm:$0x1] %vm389_vm0, %v1842_v17 }
  0x1b   : > { %406 = vst.msk [vmem:[#allocation2 + $0x69] sm:$0x1] %vm389_vm0, %v1842_v17 }
  0x1c   : > { %407 = vst.msk [vmem:[#allocation2 + $0x79] sm:$0x1] %vm389_vm0, %v1842_v17 }
  0x1d   : > { %408 = vst.msk [vmem:[#allocation2 + $0x89] sm:$0x1] %vm389_vm0, %v1842_v17 }
  0x1e   : > { %390 = vst.msk [vmem:[#allocation2] sm:$0x1] %vm389_vm0, %v1842_v17 }
  0x1f   : > { %336 = vrot.lane.b32.xlu1 %v1937_v6, %s1841_s30  ;;  %334 = vrot.lane.b32.xlu0 %v1940_v7, %s1841_s30  ;;  %399 = vst.msk [vmem:[#allocation2 + $0x90] sm:$0x1] %vm389_vm0, %v1842_v17 }
  0x20   : > { %310 = vrot.lane.b32.xlu2 %v1943_v8, %s1841_s30  ;;  %385 = vst.msk [vmem:[#allocation2 + $0x8] sm:$0x3] %vm384_vm2, %v1842_v17 }
  0x21   : > { %388 = vst.msk [vmem:[#allocation2 + $0x98] sm:$0x3] %vm384_vm2, %v1842_v17  ;;  %vm1359_vm2 = vcmask 588800  }
  0x22   : > { %400 = vst.msk [vmem:[#allocation2 + $0x9] sm:$0x1] %vm389_vm0, %v1842_v17 }
  0x23   : > { %409 = vst.msk [vmem:[#allocation2 + $0x99] sm:$0x1] %vm389_vm0, %v1842_v17  ;;  %vm1336_vm0 = vcmask 457728  }
  0x24   : > { %921 = vst.msk [vmem:[#allocation3] sm:$0xff] %vm756_vm3, %v1842_v17 }
  0x25   : > { %925 = vst.msk [vmem:[#allocation3 + $0x90] sm:$0xff] %vm756_vm3, %v1842_v17 }
  0x26   : > { %943 = vst.msk [vmem:[#allocation3 + $0x59] sm:$0x1] %vm927_vm12, %v1842_v17 }
  0x27   : > { %314 = vrot.lane.b32.xlu1 %v1952_v9, %s1841_s30  ;;  %312 = vrot.lane.b32.xlu0 %v1955_v10, %s1841_s30  ;;  %944 = vst.msk [vmem:[#allocation3 + $0x69] sm:$0x1] %vm927_vm12, %v1842_v17 }
  0x28   : > { %316 = vrot.lane.b32.xlu2 %v1958_v11, %s1841_s30  ;;  %928 = vst.msk [vmem:[#allocation3] sm:$0x1] %vm927_vm12, %v1842_v17 }
  0x29   : > { %929 = vst.msk [vmem:[#allocation3 + $0x10] sm:$0x1] %vm927_vm12, %v1842_v17 }
  0x2a   : > { %930 = vst.msk [vmem:[#allocation3 + $0x20] sm:$0x1] %vm927_vm12, %v1842_v17 }
  0x2b   : > { %931 = vst.msk [vmem:[#allocation3 + $0x30] sm:$0x1] %vm927_vm12, %v1842_v17 }
  0x2c   : > { %932 = vst.msk [vmem:[#allocation3 + $0x40] sm:$0x1] %vm927_vm12, %v1842_v17 }
  0x2d   : > { %933 = vst.msk [vmem:[#allocation3 + $0x50] sm:$0x1] %vm927_vm12, %v1842_v17 }
  0x2e   : > { %934 = vst.msk [vmem:[#allocation3 + $0x60] sm:$0x1] %vm927_vm12, %v1842_v17 }
  0x2f   : > { %320 = vrot.lane.b32.xlu1 %v1967_v12, %s1841_s30  ;;  %318 = vrot.lane.b32.xlu0 %v1970_v13, %s1841_s30  ;;  %935 = vst.msk [vmem:[#allocation3 + $0x70] sm:$0x1] %vm927_vm12, %v1842_v17 }
  0x30   : > { %338 = vrot.lane.b32.xlu2 %v1973_v14, %s1841_s30  ;;  %936 = vst.msk [vmem:[#allocation3 + $0x80] sm:$0x1] %vm927_vm12, %v1842_v17 }
  0x31   : > { %937 = vst.msk [vmem:[#allocation3 + $0x90] sm:$0x1] %vm927_vm12, %v1842_v17 }
  0x32   : > { %939 = vst.msk [vmem:[#allocation3 + $0x19] sm:$0x1] %vm927_vm12, %v1842_v17 }
  0x33   : > { %940 = vst.msk [vmem:[#allocation3 + $0x29] sm:$0x1] %vm927_vm12, %v1842_v17 }
  0x34   : > { %941 = vst.msk [vmem:[#allocation3 + $0x39] sm:$0x1] %vm927_vm12, %v1842_v17 }
  0x35   : > { %942 = vst.msk [vmem:[#allocation3 + $0x49] sm:$0x1] %vm927_vm12, %v1842_v17 }
  0x36   : > { %945 = vst.msk [vmem:[#allocation3 + $0x79] sm:$0x1] %vm927_vm12, %v1842_v17 }
  0x37   : > { %340 = vrot.lane.b32.xlu0 %v1982_v15, %s1841_s30  ;;  %946 = vst.msk [vmem:[#allocation3 + $0x89] sm:$0x1] %vm927_vm12, %v1842_v17  ;;  %s1853_s30 = smov 56  }
  0x38   : > { %926 = vst.msk [vmem:[#allocation3 + $0x98] sm:$0x3] %vm922_vm13, %v1842_v17 }
  0x39   : > { %923 = vst.msk [vmem:[#allocation3 + $0x8] sm:$0x3] %vm922_vm13, %v1842_v17 }
  0x3a   : > { %947 = vst.msk [vmem:[#allocation3 + $0x99] sm:$0x1] %vm927_vm12, %v1842_v17 }
  0x3b   : > { %938 = vst.msk [vmem:[#allocation3 + $0x9] sm:$0x1] %vm927_vm12, %v1842_v17 }
  0x6a   : > { %v331_v16 = vpop.permute.xlu2 %330 }
  0x6b   : > { %v368_v18 = vmax.f32 %v288_v2, %v331_v16  ;;  %v427_v2 = vld [vmem:[#allocation2 + $0x1] sm:$0xff] }
  0x72   : > { %v333_v19 = vpop.permute.xlu2 %332 }
  0x73   : > { %v369_v20 = vmax.f32 %v289_v5, %v333_v19 }
  0x75   : > { %v379_v21 = vmax.f32 %v368_v18, %v369_v20 }
  0x77   : > { %416 = vst.msk [vmem:[#allocation2 + $0x61] sm:$0xff] %vm382_vm1, %v379_v21 }
  0x7a   : > { %v311_v30 = vpop.permute.xlu2 %310 }
  0x7b   : > { %v358_v48 = vmax.f32 %v1943_v8, %v311_v30 }
  0x7e   : > { %v2041_v37 = vld [vmem:[#allocation2 + $0x60] sm:$0xff] }
  0x7f   : > { %v456_v55 = vld [vmem:[#allocation2 + $0x61] sm:$0xff] }
  0x80   : > { %v464_v56 = vld [vmem:[#allocation2 + $0x62] sm:$0xff] }
  0x81   : > { %v327_v22 = vpop.permute.xlu1 %326  ;;  %v323_v23 = vpop.permute.xlu0 %322 }
  0x82   : > { %v366_v26 = vmax.f32 %v1913_v0, %v327_v22  ;;  %v364_v27 = vmax.f32 %v1916_v1, %v323_v23  ;;  %v317_v42 = vpop.permute.xlu2 %316 }
  0x83   : > { %v361_v49 = vmax.f32 %v1958_v11, %v317_v42  ;;  %v483_v42 = vld [vmem:[#allocation2 + $0x91] sm:$0xff] }
  0x89   : > { %v329_v24 = vpop.permute.xlu1 %328  ;;  %v325_v25 = vpop.permute.xlu0 %324 }
  0x8a   : > { %v367_v28 = vmax.f32 %v1925_v3, %v329_v24  ;;  %v365_v29 = vmax.f32 %v1928_v4, %v325_v25 }
  0x8c   : > { %v378_v31 = vmax.f32 %v366_v26, %v367_v28  ;;  %v377_v32 = vmax.f32 %v364_v27, %v365_v29 }
  0x8e   : > { %415 = vst.msk [vmem:[#allocation2 + $0x51] sm:$0xff] %vm382_vm1, %v378_v31 }
  0x8f   : > { %414 = vst.msk [vmem:[#allocation2 + $0x41] sm:$0xff] %vm382_vm1, %v377_v32 }
  0x91   : > { %v337_v33 = vpop.permute.xlu1 %336  ;;  %v335_v34 = vpop.permute.xlu0 %334 }
  0x92   : > { %v371_v35 = vmax.f32 %v1937_v6, %v337_v33  ;;  %v370_v36 = vmax.f32 %v1940_v7, %v335_v34  ;;  %v339_v7 = vpop.permute.xlu2 %338 }
  0x93   : > { %v372_v11 = vmax.f32 %v1973_v14, %v339_v7 }
  0x94   : > { %v380_v38 = vmax.f32 %v370_v36, %v371_v35 }
  0x95   : > { %v432_v39 = vld [vmem:[#allocation2 + $0x51] sm:$0xff] }
  0x96   : > { %v2043_v40 = vld [vmem:[#allocation2 + $0x50] sm:$0xff]  ;;  %417 = vst.msk [vmem:[#allocation2 + $0x71] sm:$0xff] %vm382_vm1, %v380_v38  ;;  %v2046_v43 = vld [vmem:[#allocation2 + $0x41] sm:$0xff]  ;;  %v1524_v60 = vpack.i.bf16 %v456_v55, %v432_v39 }
  0x97   : > { %v440_v41 = vld [vmem:[#allocation2 + $0x52] sm:$0xff]  ;;  %v1519_v44 = vpack.i.bf16 %v2041_v37, %v2043_v40  ;;  %v2050_v45 = vld [vmem:[#allocation2 + $0x42] sm:$0xff]  ;;  %v2053_v46 = vpack.i.bf16 %v432_v39, %v2046_v43 }
  0x98   : > { %v2056_v47 = vpack.i.bf16 %v440_v41, %v2050_v45  ;;  %v1529_v61 = vpack.i.bf16 %v464_v56, %v440_v41  ;;  %v491_v39 = vld [vmem:[#allocation2 + $0x92] sm:$0xff] }
  0x99   : > { %1520 = vrot.lane.b32.xlu0 %v1519_v44, %s1843_s8  ;;  %1510 = vrot.lane.b32.xlu1 %v2053_v46, %s1844_s9  ;;  %v315_v50 = vpop.permute.xlu1 %314  ;;  %v313_v51 = vpop.permute.xlu0 %312  ;;  %v475_v41 = vld [vmem:[#allocation2 + $0x90] sm:$0xff] }
  0x9a   : > { %1515 = vrot.lane.b32.xlu2 %v2056_v47, %s1845_s10  ;;  %v360_v52 = vmax.f32 %v1952_v9, %v315_v50  ;;  %v359_v53 = vmax.f32 %v1955_v10, %v313_v51  ;;  %v446_v50 = vld [vmem:[#allocation2 + $0x40] sm:$0xff] }
  0x9c   : > { %v374_v54 = vmax.f32 %v358_v48, %v359_v53  ;;  %v375_v57 = vmax.f32 %v360_v52, %v361_v49  ;;  %v1654_v52 = vpack.i.bf16 %v2043_v40, %v446_v50 }
  0x9d   : > { %v2067_v58 = vld [vmem:[#allocation2 + $0x70] sm:$0xff] }
  0x9e   : > { %411 = vst.msk [vmem:[#allocation2 + $0x11] sm:$0xff] %vm382_vm1, %v374_v54  ;;  %v1534_v59 = vpack.i.bf16 %v2067_v58, %v2041_v37  ;;  %v481_v4 = vld [vmem:[#allocation2 + $0x71] sm:$0xff] }
  0x9f   : > { %412 = vst.msk [vmem:[#allocation2 + $0x21] sm:$0xff] %vm382_vm1, %v375_v57  ;;  %v489_v5 = vld [vmem:[#allocation2 + $0x72] sm:$0xff]  ;;  %v1539_v9 = vpack.i.bf16 %v481_v4, %v456_v55 }
  0xa0   : > { %v1544_v10 = vpack.i.bf16 %v489_v5, %v464_v56 }
  0xa1   : > { %1535 = vrot.lane.b32.xlu0 %v1534_v59, %s1846_s11  ;;  %1525 = vrot.lane.b32.xlu1 %v1524_v60, %s1847_s12  ;;  %v321_v62 = vpop.permute.xlu1 %320  ;;  %v319_v63 = vpop.permute.xlu0 %318 }
  0xa2   : > { %1530 = vrot.lane.b32.xlu2 %v1529_v61, %s1848_s13  ;;  %v363_v0 = vmax.f32 %v1967_v12, %v321_v62  ;;  %v362_v1 = vmax.f32 %v1970_v13, %v319_v63  ;;  %v435_v13 = vld [vmem:[#allocation2 + $0x2] sm:$0xff] }
  0xa4   : > { %v376_v3 = vmax.f32 %v362_v1, %v363_v0 }
  0xa5   : > { %v428_v6 = vld [vmem:[#allocation2 + $0x11] sm:$0xff] }
  0xa6   : > { %413 = vst.msk [vmem:[#allocation2 + $0x31] sm:$0xff] %vm382_vm1, %v376_v3  ;;  %v1549_v8 = vpack.i.bf16 %v428_v6, %v427_v2  ;;  %v452_v16 = vld [vmem:[#allocation2 + $0x21] sm:$0xff]  ;;  %v436_v19 = vld [vmem:[#allocation2 + $0x12] sm:$0xff] }
  0xa7   : > { %v2084_v20 = vld [vmem:[#allocation2 + $0x10] sm:$0xff]  ;;  %v2086_v21 = vld [vmem:[#allocation2 + $0x20] sm:$0xff]  ;;  %v1564_v23 = vpack.i.bf16 %v452_v16, %v428_v6  ;;  %v1554_v24 = vpack.i.bf16 %v436_v19, %v435_v13 }
  0xa8   : > { %v1559_v14 = vpack.i.bf16 %v2086_v21, %v2084_v20 }
  0xa9   : > { %1550 = vrot.lane.b32.xlu0 %v1549_v8, %s1844_s9  ;;  %1540 = vrot.lane.b32.xlu1 %v1539_v9, %s1849_s14  ;;  %v341_v12 = vpop.permute.xlu0 %340 }
  0xaa   : > { %1545 = vrot.lane.b32.xlu2 %v1544_v10, %s1850_s15  ;;  %v373_v18 = vmax.f32 %v1982_v15, %v341_v12  ;;  %v460_v15 = vld [vmem:[#allocation2 + $0x22] sm:$0xff] }
  0xab   : > { %v1574_v25 = vpack.i.bf16 %v460_v15, %v436_v19 }
  0xac   : > { %v381_v22 = vmax.f32 %v372_v11, %v373_v18 }
  0xad   : > { %v477_v27 = vld [vmem:[#allocation2 + $0x31] sm:$0xff] }
  0xae   : > { %418 = vst.msk [vmem:[#allocation2 + $0x81] sm:$0xff] %vm382_vm1, %v381_v22  ;;  %v2097_v28 = vld [vmem:[#allocation2 + $0x30] sm:$0xff]  ;;  %v1594_v29 = vpack.i.bf16 %v477_v27, %v452_v16  ;;  %v1644_v53 = vpack.i.bf16 %v2046_v43, %v477_v27 }
  0xaf   : > { %v1584_v30 = vpack.i.bf16 %v2097_v28, %v2086_v21  ;;  %v485_v35 = vld [vmem:[#allocation2 + $0x32] sm:$0xff]  ;;  %v1639_v51 = vpack.i.bf16 %v446_v50, %v2097_v28  ;;  %v827_v43 = vld [vmem:[%s2493_s1 + $0x10] sm:$0x3] }
  0xb0   : > { %v1604_v38 = vpack.i.bf16 %v485_v35, %v460_v15  ;;  %v1649_v54 = vpack.i.bf16 %v2050_v45, %v485_v35  ;;  %v837_v45 = vunpack.c.l.b16 %v827_v43 }
  0xb1   : > { %1565 = vrot.lane.b32.xlu0 %v1564_v23, %s1847_s12  ;;  %1555 = vrot.lane.b32.xlu1 %v1554_v24, %s1845_s10 }
  0xb2   : > { %1560 = vrot.lane.b32.xlu2 %v1559_v14, %s1843_s8  ;;  %v840_v55 = vpack.c.b16 %v837_v45, %v837_v45 }
  0xb4   : > { %v858_v57 = vsel %vm856_vm4, %v840_v55, 0 }
  0xb5   : > { %v450_v26 = vld [vmem:[#allocation2 + $0x80] sm:$0xff]  ;;  %1483 = vmatpush.bf16.msra.mxu2 %v858_v57  ;;  %865 = vmatpush.bf16.msra.mxu0 %v858_v57 }
  0xb6   : > { %v1589_v31 = vpack.i.bf16 %v450_v26, %v2067_v58  ;;  %v466_v32 = vld [vmem:[#allocation2 + $0x82] sm:$0xff]  ;;  %v1614_v48 = vpack.i.bf16 %v475_v41, %v450_v26 }
  0xb7   : > { %v458_v33 = vld [vmem:[#allocation2 + $0x81] sm:$0xff]  ;;  %v1609_v34 = vpack.i.bf16 %v466_v32, %v489_v5  ;;  %v1624_v44 = vpack.i.bf16 %v491_v39, %v466_v32 }
  0xb8   : > { %v1599_v36 = vpack.i.bf16 %v458_v33, %v481_v4  ;;  %v1619_v49 = vpack.i.bf16 %v483_v42, %v458_v33 }
  0xb9   : > { %1580 = vrot.lane.b32.xlu0 %v1544_v10, %s1845_s10  ;;  %1570 = vrot.lane.b32.xlu1 %v1539_v9, %s1844_s9 }
  0xba   : > { %1575 = vrot.lane.b32.xlu2 %v1574_v25, %s1848_s13 }
  0xc1   : > { %1595 = vrot.lane.b32.xlu0 %v1594_v29, %s1849_s14  ;;  %1585 = vrot.lane.b32.xlu1 %v1584_v30, %s1846_s11 }
  0xc2   : > { %1590 = vrot.lane.b32.xlu2 %v1589_v31, %s1843_s8 }
  0xc9   : > { %1610 = vrot.lane.b32.xlu0 %v1609_v34, %s1848_s13  ;;  %1600 = vrot.lane.b32.xlu1 %v1599_v36, %s1847_s12 }
  0xca   : > { %1605 = vrot.lane.b32.xlu2 %v1604_v38, %s1850_s15 }
  0xd1   : > { %1625 = vrot.lane.b32.xlu0 %v1624_v44, %s1850_s15  ;;  %1615 = vrot.lane.b32.xlu1 %v1614_v48, %s1846_s11 }
  0xd2   : > { %1620 = vrot.lane.b32.xlu2 %v1619_v49, %s1849_s14 }
  0xd9   : > { %1640 = vrot.lane.b32.xlu0 %v1639_v51, %s1843_s8  ;;  %1630 = vrot.lane.b32.xlu1 %v1594_v29, %s1844_s9  ;;  %s1854_s8 = smov 48  }
  0xda   : > { %1635 = vrot.lane.b32.xlu2 %v1604_v38, %s1845_s10 }
  0xe1   : > { %1655 = vrot.lane.b32.xlu0 %v1654_v52, %s1846_s11  ;;  %1645 = vrot.lane.b32.xlu1 %v1644_v53, %s1847_s12 }
  0xe2   : > { %1650 = vrot.lane.b32.xlu2 %v1649_v54, %s1848_s13 }
  0xe9   : > { %1660 = vrot.lane.b32.xlu1 %v2053_v46, %s1849_s14  ;;  %v1482_v46 = vld [vmem:[%s2493_s1 + $0x8] sm:$0xff] }
  0xea   : > { %1665 = vrot.lane.b32.xlu2 %v2056_v47, %s1850_s15  ;;  %1484 = vmatpush.bf16.msra.mxu2 %v1482_v46  ;;  %v1481_v47 = vld [vmem:[%s2493_s1] sm:$0xff] }
  0xeb   : > { %866 = vmatpush.bf16.msra.mxu0 %v1482_v46 }
  0xee   : > { %1485 = vmatpush.bf16.msra.mxu2 %v1481_v47 }
  0xef   : > { %867 = vmatpush.bf16.msra.mxu0 %v1481_v47 }
  0xf4   : > { %v1516_v56 = vpop.permute.xlu2 %1515 }
  0xf5   : > { %v1518_v3 = vunpack.i.h.bf16 %v1516_v56  ;;  %v1517_v4 = vunpack.i.l.bf16 %v1516_v56 }
  0xfc   : > { %v1531_v59 = vpop.permute.xlu2 %1530 }
  0xfd   : > { %v1533_v22 = vunpack.i.h.bf16 %v1531_v59  ;;  %v1532_v23 = vunpack.i.l.bf16 %v1531_v59 }
 0x104   : > { %v1546_v60 = vpop.permute.xlu2 %1545 }
 0x105   : > { %v1548_v31 = vunpack.i.h.bf16 %v1546_v60  ;;  %v1547_v32 = vunpack.i.l.bf16 %v1546_v60 }
 0x10b   : > { %v1521_v61 = vpop.permute.xlu0 %1520  ;;  %v1511_v62 = vpop.permute.xlu1 %1510 }
 0x10c   : > { %v1513_v63 = vunpack.i.h.bf16 %v1511_v62  ;;  %v1512_v0 = vunpack.i.l.bf16 %v1511_v62  ;;  %v1523_v9 = vunpack.i.h.bf16 %v1521_v61  ;;  %v1522_v10 = vunpack.i.l.bf16 %v1521_v61  ;;  %v1561_v11 = vpop.permute.xlu2 %1560 }
 0x10d   : > { %v1563_v47 = vunpack.i.h.bf16 %v1561_v11  ;;  %v1562_v59 = vunpack.i.l.bf16 %v1561_v11 }
 0x10e   : > { %v753_v1 = vsel %vm382_vm1, %v2043_v40, %v1513_v63  ;;  %v752_v2 = vsel %vm382_vm1, %v446_v50, %v1512_v0  ;;  %v419_v50 = vld [vmem:[#allocation2] sm:$0xff] }
 0x10f   : > { %v761_v6 = vsel %vm756_vm3, %v752_v2, %v1517_v4  ;;  %v762_v7 = vsel %vm756_vm3, %v753_v1, %v1518_v3 }
 0x110   : > { %v770_v16 = vsel %vm765_vm5, %v761_v6, %v1522_v10  ;;  %v771_v40 = vsel %vm765_vm5, %v762_v7, %v1523_v9 }
 0x113   : > { %v1536_v5 = vpop.permute.xlu0 %1535  ;;  %v1526_v8 = vpop.permute.xlu1 %1525 }
 0x114   : > { %v1528_v12 = vunpack.i.h.bf16 %v1526_v8  ;;  %v1527_v13 = vunpack.i.l.bf16 %v1526_v8  ;;  %v1538_v25 = vunpack.i.h.bf16 %v1536_v5  ;;  %v1537_v26 = vunpack.i.l.bf16 %v1536_v5  ;;  %v1576_v35 = vpop.permute.xlu2 %1575 }
 0x115   : > { %v1577_v4 = vunpack.i.l.bf16 %v1576_v35 }
 0x116   : > { %v779_v18 = vsel %vm774_vm6, %v770_v16, %v1527_v13  ;;  %v780_v19 = vsel %vm774_vm6, %v771_v40, %v1528_v12 }
 0x117   : > { %v788_v24 = vsel %vm783_vm7, %v779_v18, %v1532_v23  ;;  %v789_v14 = vsel %vm783_vm7, %v780_v19, %v1533_v22 }
 0x118   : > { %v797_v33 = vsel %vm792_vm8, %v788_v24, %v1537_v26  ;;  %v798_v34 = vsel %vm792_vm8, %v789_v14, %v1538_v25 }
 0x11b   : > { %v1551_v15 = vpop.permute.xlu0 %1550  ;;  %v1541_v27 = vpop.permute.xlu1 %1540 }
 0x11c   : > { %v1543_v29 = vunpack.i.h.bf16 %v1541_v27  ;;  %v1542_v30 = vunpack.i.l.bf16 %v1541_v27  ;;  %v1552_v49 = vunpack.i.l.bf16 %v1551_v15  ;;  %v1553_v51 = vunpack.i.h.bf16 %v1551_v15  ;;  %v1591_v52 = vpop.permute.xlu2 %1590 }
 0x11e   : > { %v806_v36 = vsel %vm801_vm9, %v797_v33, %v1542_v30  ;;  %v807_v38 = vsel %vm801_vm9, %v798_v34, %v1543_v29  ;;  %v748_v43 = vsel %vm382_vm1, %v419_v50, %v1552_v49  ;;  %v749_v55 = vsel %vm382_vm1, %v2084_v20, %v1553_v51 }
 0x11f   : > { %v815_v39 = vsel %vm810_vm10, %v806_v36, %v1547_v32  ;;  %v816_v41 = vsel %vm810_vm10, %v807_v38, %v1548_v31  ;;  %v1578_v20 = vunpack.i.h.bf16 %v1576_v35  ;;  %v1593_v38 = vunpack.i.h.bf16 %v1591_v52 }
 0x120   : > { %v821_v42 = vpack.c.bf16 %v816_v41, %v815_v39  ;;  %v1592_v39 = vunpack.i.l.bf16 %v1591_v52 }
 0x122   : > { %1475 = vmatmul.msk.bf16.vlgmr.msra.gmra.mxu2 %vm843_vm11, %v821_v42 }
 0x123   : > { %v1566_v44 = vpop.permute.xlu0 %1565  ;;  %v1556_v48 = vpop.permute.xlu1 %1555 }
 0x124   : > { %v1558_v53 = vunpack.i.h.bf16 %v1556_v48  ;;  %v1557_v54 = vunpack.i.l.bf16 %v1556_v48  ;;  %v1568_v62 = vunpack.i.h.bf16 %v1566_v44  ;;  %v1567_v63 = vunpack.i.l.bf16 %v1566_v44  ;;  %v1606_v2 = vpop.permute.xlu2 %1605 }
 0x125   : > { %v1608_v12 = vunpack.i.h.bf16 %v1606_v2  ;;  %v1607_v13 = vunpack.i.l.bf16 %v1606_v2 }
 0x126   : > { %v757_v57 = vsel %vm756_vm3, %v748_v43, %v1557_v54  ;;  %v758_v46 = vsel %vm756_vm3, %v749_v55, %v1558_v53 }
 0x127   : > { %v766_v60 = vsel %vm765_vm5, %v757_v57, %v1562_v59  ;;  %v767_v61 = vsel %vm765_vm5, %v758_v46, %v1563_v47 }
 0x128   : > { %v775_v0 = vsel %vm774_vm6, %v766_v60, %v1567_v63  ;;  %v776_v1 = vsel %vm774_vm6, %v767_v61, %v1568_v62 }
 0x129   : > { %v784_v10 = vsel %vm783_vm7, %v775_v0, %v1577_v4  ;;  %v785_v11 = vsel %vm783_vm7, %v776_v1, %v1578_v20 }
 0x12b   : > { %v1581_v45 = vpop.permute.xlu0 %1580  ;;  %v1571_v56 = vpop.permute.xlu1 %1570 }
 0x12c   : > { %v1573_v18 = vunpack.i.h.bf16 %v1571_v56  ;;  %v1572_v19 = vunpack.i.l.bf16 %v1571_v56  ;;  %v1583_v25 = vunpack.i.h.bf16 %v1581_v45  ;;  %v1582_v26 = vunpack.i.l.bf16 %v1581_v45  ;;  %v1621_v32 = vpop.permute.xlu2 %1620 }
 0x12d   : > { %v1623_v54 = vunpack.i.h.bf16 %v1621_v32  ;;  %v1622_v43 = vunpack.i.l.bf16 %v1621_v32 }
 0x12e   : > { %v755_v29 = vsel %vm382_vm1, %v2067_v58, %v1573_v18  ;;  %v754_v30 = vsel %vm382_vm1, %v2041_v37, %v1572_v19 }
 0x12f   : > { %v764_v33 = vsel %vm756_vm3, %v755_v29, %v1583_v25  ;;  %v763_v34 = vsel %vm756_vm3, %v754_v30, %v1582_v26 }
 0x130   : > { %v772_v44 = vsel %vm765_vm5, %v763_v34, %v1592_v39  ;;  %v773_v58 = vsel %vm765_vm5, %v764_v33, %v1593_v38 }
 0x133   : > { %v1596_v3 = vpop.permute.xlu0 %1595  ;;  %v1586_v5 = vpop.permute.xlu1 %1585 }
 0x134   : > { %v1598_v6 = vunpack.i.h.bf16 %v1596_v3  ;;  %v1597_v7 = vunpack.i.l.bf16 %v1596_v3  ;;  %v1588_v8 = vunpack.i.h.bf16 %v1586_v5  ;;  %v1587_v9 = vunpack.i.l.bf16 %v1586_v5  ;;  %v1636_v55 = vpop.permute.xlu2 %1635 }
 0x135   : > { %v1638_v5 = vunpack.i.h.bf16 %v1636_v55 }
 0x136   : > { %v793_v16 = vsel %vm792_vm8, %v784_v10, %v1587_v9  ;;  %v794_v40 = vsel %vm792_vm8, %v785_v11, %v1588_v8 }
 0x137   : > { %v802_v22 = vsel %vm801_vm9, %v793_v16, %v1597_v7  ;;  %v803_v23 = vsel %vm801_vm9, %v794_v40, %v1598_v6  ;;  %v1637_v6 = vunpack.i.l.bf16 %v1636_v55 }
 0x138   : > { %v811_v24 = vsel %vm810_vm10, %v802_v22, %v1607_v13  ;;  %v812_v14 = vsel %vm810_vm10, %v803_v23, %v1608_v12 }
 0x139   : > { %v819_v15 = vpack.c.bf16 %v812_v14, %v811_v24 }
 0x13b   : > { %v1611_v27 = vpop.permute.xlu0 %1610  ;;  %v1601_v31 = vpop.permute.xlu1 %1600  ;;  %1473 = vmatmul.msk.bf16.vlgmr.msra.gmra.mxu0 %vm843_vm11, %v819_v15 }
 0x13c   : > { %v1603_v35 = vunpack.i.h.bf16 %v1601_v31  ;;  %v1602_v36 = vunpack.i.l.bf16 %v1601_v31  ;;  %v1613_v41 = vunpack.i.h.bf16 %v1611_v27  ;;  %v1612_v42 = vunpack.i.l.bf16 %v1611_v27  ;;  %v1651_v7 = vpop.permute.xlu2 %1650 }
 0x13d   : > { %v1653_v40 = vunpack.i.h.bf16 %v1651_v7  ;;  %v1652_v18 = vunpack.i.l.bf16 %v1651_v7 }
 0x13e   : > { %v781_v37 = vsel %vm774_vm6, %v772_v44, %v1602_v36  ;;  %v782_v48 = vsel %vm774_vm6, %v773_v58, %v1603_v35  ;;  %v1832_v44 = vld [vmem:[%s2495_s3] ss:$0 sm:$0xff] }
 0x13f   : > { %v790_v45 = vsel %vm783_vm7, %v781_v37, %v1612_v42  ;;  %v791_v52 = vsel %vm783_vm7, %v782_v48, %v1613_v41  ;;  %v1831_v42 = vld [vmem:[%s2494_s2] ss:$0 sm:$0xff] }
 0x143   : > { %v1626_v49 = vpop.permute.xlu0 %1625  ;;  %v1616_v50 = vpop.permute.xlu1 %1615 }
 0x144   : > { %v1618_v51 = vunpack.i.h.bf16 %v1616_v50  ;;  %v1617_v53 = vunpack.i.l.bf16 %v1616_v50  ;;  %v1628_v56 = vunpack.i.h.bf16 %v1626_v49  ;;  %v1627_v57 = vunpack.i.l.bf16 %v1626_v49  ;;  %v1666_v15 = vpop.permute.xlu2 %1665 }
 0x145   : > { %v1668_v31 = vunpack.i.h.bf16 %v1666_v15  ;;  %v1667_v32 = vunpack.i.l.bf16 %v1666_v15 }
 0x146   : > { %v799_v46 = vsel %vm792_vm8, %v790_v45, %v1617_v53  ;;  %v800_v47 = vsel %vm792_vm8, %v791_v52, %v1618_v51 }
 0x147   : > { %v808_v59 = vsel %vm801_vm9, %v799_v46, %v1622_v43  ;;  %v809_v60 = vsel %vm801_vm9, %v800_v47, %v1623_v54 }
 0x148   : > { %v817_v61 = vsel %vm810_vm10, %v808_v59, %v1627_v57  ;;  %v818_v62 = vsel %vm810_vm10, %v809_v60, %v1628_v56 }
 0x149   : > { %v822_v63 = vpack.c.bf16 %v818_v62, %v817_v61 }
 0x14b   : > { %v1631_v0 = vpop.permute.xlu1 %1630  ;;  %1476 = vmatmul.msk.bf16.gmra.mxu2 %vm843_vm11, %v822_v63  ;;  %v1641_v3 = vpop.permute.xlu0 %1640 }
 0x14c   : > { %v1633_v1 = vunpack.i.h.bf16 %v1631_v0  ;;  %v1632_v2 = vunpack.i.l.bf16 %v1631_v0  ;;  %v1643_v10 = vunpack.i.h.bf16 %v1641_v3  ;;  %v1642_v11 = vunpack.i.l.bf16 %v1641_v3 }
 0x14e   : > { %v751_v20 = vsel %vm382_vm1, %v2097_v28, %v1633_v1  ;;  %v750_v4 = vsel %vm382_vm1, %v2086_v21, %v1632_v2  ;;  %vm1345_vm1 = vcmask 523264  }
 0x14f   : > { %v759_v8 = vsel %vm756_vm3, %v750_v4, %v1637_v6  ;;  %v760_v9 = vsel %vm756_vm3, %v751_v20, %v1638_v5 }
 0x150   : > { %v768_v19 = vsel %vm765_vm5, %v759_v8, %v1642_v11  ;;  %v769_v28 = vsel %vm765_vm5, %v760_v9, %v1643_v10 }
 0x153   : > { %v1646_v12 = vpop.permute.xlu1 %1645  ;;  %v1656_v14 = vpop.permute.xlu0 %1655 }
 0x154   : > { %v1648_v13 = vunpack.i.h.bf16 %v1646_v12  ;;  %v1647_v16 = vunpack.i.l.bf16 %v1646_v12  ;;  %v1658_v25 = vunpack.i.h.bf16 %v1656_v14  ;;  %v1657_v26 = vunpack.i.l.bf16 %v1656_v14 }
 0x156   : > { %v777_v21 = vsel %vm774_vm6, %v768_v19, %v1647_v16  ;;  %v778_v22 = vsel %vm774_vm6, %v769_v28, %v1648_v13 }
 0x157   : > { %v786_v23 = vsel %vm783_vm7, %v777_v21, %v1652_v18  ;;  %v787_v24 = vsel %vm783_vm7, %v778_v22, %v1653_v40 }
 0x158   : > { %v795_v33 = vsel %vm792_vm8, %v786_v23, %v1657_v26  ;;  %v796_v34 = vsel %vm792_vm8, %v787_v24, %v1658_v25 }
 0x15b   : > { %v1661_v27 = vpop.permute.xlu1 %1660 }
 0x15c   : > { %v1663_v29 = vunpack.i.h.bf16 %v1661_v27  ;;  %v1662_v30 = vunpack.i.l.bf16 %v1661_v27 }
 0x15e   : > { %v804_v35 = vsel %vm801_vm9, %v795_v33, %v1662_v30  ;;  %v805_v36 = vsel %vm801_vm9, %v796_v34, %v1663_v29 }
 0x15f   : > { %v813_v38 = vsel %vm810_vm10, %v804_v35, %v1667_v32  ;;  %v814_v39 = vsel %vm810_vm10, %v805_v36, %v1668_v31 }
 0x160   : > { %v820_v41 = vpack.c.bf16 %v814_v39, %v813_v38 }
 0x162   : > { %1474 = vmatmul.msk.bf16.gmra.mxu0 %vm843_vm11, %v820_v41 }
 0x1a5   : > { %v879_v58 = vpop.f32.mrf.mxu2 }
 0x1a6   : > { %v897_v37 = vmul.f32 %v1831_v42, %v879_v58 }
 0x1a8   : > { %v909_v48 = vadd.f32 %v1832_v44, %v897_v37 }
 0x1aa   : > { %v917_v49 = vmax.f32 %v909_v48, 0.0 }
 0x1ac   : > { %953 = vst.msk [vmem:[#allocation3 + $0x51] sm:$0xff] %vm756_vm3, %v917_v49 }
 0x1ad   : > { %v881_v50 = vpop.f32.mrf.mxu2 }
 0x1ae   : > { %v898_v51 = vmul.f32 %v1831_v42, %v881_v50  ;;  %v1013_v50 = vld [vmem:[#allocation3 + $0x90] sm:$0xff] }
 0x1b0   : > { %v910_v53 = vadd.f32 %v1832_v44, %v898_v51  ;;  %v1021_v51 = vld [vmem:[#allocation3 + $0x91] sm:$0xff] }
 0x1b2   : > { %v918_v54 = vmax.f32 %v910_v53, 0.0 }
 0x1b3   : > { %v1001_v52 = vld [vmem:[#allocation3 + $0x52] sm:$0xff] }
 0x1b4   : > { %954 = vst.msk [vmem:[#allocation3 + $0x61] sm:$0xff] %vm756_vm3, %v918_v54  ;;  %v2262_v17 = vld [vmem:[#allocation3 + $0x51] sm:$0xff] }
 0x1b5   : > { %v2264_v55 = vld [vmem:[#allocation3 + $0x50] sm:$0xff] }
 0x1b8   : > { %v869_v43 = vpop.f32.mrf.mxu0 }
 0x1b9   : > { %v893_v45 = vmul.f32 %v1831_v42, %v869_v43 }
 0x1bb   : > { %v905_v56 = vadd.f32 %v1832_v44, %v893_v45  ;;  %v1002_v57 = vld [vmem:[#allocation3 + $0x62] sm:$0xff]  ;;  %v1029_v45 = vld [vmem:[#allocation3 + $0x92] sm:$0xff] }
 0x1bc   : > { %v994_v46 = vld [vmem:[#allocation3 + $0x61] sm:$0xff]  ;;  %v1679_v59 = vpack.i.bf16 %v1002_v57, %v1001_v52 }
 0x1bd   : > { %v2266_v47 = vld [vmem:[#allocation3 + $0x60] sm:$0xff]  ;;  %v1674_v60 = vpack.i.bf16 %v994_v46, %v2262_v17  ;;  %v913_v62 = vmax.f32 %v905_v56, 0.0 }
 0x1be   : > { %v1669_v61 = vpack.i.bf16 %v2266_v47, %v2264_v55  ;;  %1680 = vrot.lane.b32.xlu0 %v1679_v59, %s1851_s28 }
 0x1bf   : > { %1675 = vrot.lane.b32.xlu2 %v1674_v60, %s1850_s15  ;;  %949 = vst.msk [vmem:[#allocation3 + $0x11] sm:$0xff] %vm756_vm3, %v913_v62 }
 0x1c0   : > { %1670 = vrot.lane.b32.xlu1 %v1669_v61, %s1846_s11  ;;  %v871_v63 = vpop.f32.mrf.mxu0 }
 0x1c1   : > { %v894_v0 = vmul.f32 %v1831_v42, %v871_v63 }
 0x1c3   : > { %v906_v1 = vadd.f32 %v1832_v44, %v894_v0 }
 0x1c5   : > { %v914_v2 = vmax.f32 %v906_v1, 0.0 }
 0x1c6   : > { %v974_v59 = vld [vmem:[#allocation3 + $0x12] sm:$0xff] }
 0x1c7   : > { %950 = vst.msk [vmem:[#allocation3 + $0x21] sm:$0xff] %vm756_vm3, %v914_v2  ;;  %v2330_v61 = vld [vmem:[#allocation3 + $0x10] sm:$0xff] }
 0x1ce   : > { %v884_v3 = vpop.f32.mrf.mxu2  ;;  %v2281_v24 = vld [vmem:[#allocation3 + $0x22] sm:$0xff] }
 0x1cf   : > { %v899_v20 = vmul.f32 %v1831_v42, %v884_v3  ;;  %v2283_v15 = vld [vmem:[#allocation3 + $0x21] sm:$0xff]  ;;  %v1809_v1 = vpack.i.bf16 %v2281_v24, %v974_v59 }
 0x1d0   : > { %v2328_v60 = vld [vmem:[#allocation3 + $0x20] sm:$0xff] }
 0x1d1   : > { %v911_v4 = vadd.f32 %v1832_v44, %v899_v20  ;;  %v1799_v63 = vpack.i.bf16 %v2328_v60, %v2330_v61 }
 0x1d3   : > { %v919_v5 = vmax.f32 %v911_v4, 0.0 }
 0x1d5   : > { %955 = vst.msk [vmem:[#allocation3 + $0x71] sm:$0xff] %vm756_vm3, %v919_v5 }
 0x1d6   : > { %v886_v6 = vpop.f32.mrf.mxu2 }
 0x1d7   : > { %v900_v7 = vmul.f32 %v1831_v42, %v886_v6 }
 0x1d9   : > { %v912_v8 = vadd.f32 %v1832_v44, %v900_v7 }
 0x1db   : > { %v920_v9 = vmax.f32 %v912_v8, 0.0 }
 0x1dc   : > { %v972_v10 = vld [vmem:[#allocation3 + $0x71] sm:$0xff] }
 0x1dd   : > { %956 = vst.msk [vmem:[#allocation3 + $0x81] sm:$0xff] %vm756_vm3, %v920_v9  ;;  %v1694_v11 = vpack.i.bf16 %v972_v10, %v994_v46  ;;  %v1027_v40 = vld [vmem:[#allocation3 + $0x72] sm:$0xff]  ;;  %v973_v46 = vld [vmem:[#allocation3 + $0x2] sm:$0xff] }
 0x1de   : > { %v1714_v19 = vpack.i.bf16 %v1027_v40, %v1002_v57  ;;  %v2299_v32 = vld [vmem:[#allocation3 + $0x70] sm:$0xff]  ;;  %v1794_v62 = vpack.i.bf16 %v974_v59, %v973_v46 }
 0x1df   : > { %v874_v12 = vpop.f32.mrf.mxu0  ;;  %1695 = vrot.lane.b32.xlu0 %v1694_v11, %s1845_s10  ;;  %v1704_v35 = vpack.i.bf16 %v2299_v32, %v2266_v47 }
 0x1e0   : > { %v895_v13 = vmul.f32 %v1831_v42, %v874_v12 }
 0x1e2   : > { %v907_v16 = vadd.f32 %v1832_v44, %v895_v13 }
 0x1e4   : > { %v915_v18 = vmax.f32 %v907_v16, 0.0  ;;  %v996_v58 = vld [vmem:[#allocation3 + $0x81] sm:$0xff] }
 0x1e5   : > { %v1759_v48 = vpack.i.bf16 %v996_v58, %v972_v10  ;;  %v1004_v49 = vld [vmem:[#allocation3 + $0x82] sm:$0xff]  ;;  %v1779_v43 = vpack.i.bf16 %v1021_v51, %v996_v58 }
 0x1e6   : > { %951 = vst.msk [vmem:[#allocation3 + $0x31] sm:$0xff] %vm756_vm3, %v915_v18  ;;  %v1764_v53 = vpack.i.bf16 %v1004_v49, %v1027_v40  ;;  %v1789_v56 = vpack.i.bf16 %v1029_v45, %v1004_v49 }
 0x1e7   : > { %v876_v28 = vpop.f32.mrf.mxu0  ;;  %1715 = vrot.lane.b32.xlu0 %v1714_v19, %s1852_s29 }
 0x1e8   : > { %v896_v21 = vmul.f32 %v1831_v42, %v876_v28 }
 0x1ea   : > { %v908_v22 = vadd.f32 %v1832_v44, %v896_v21  ;;  %v988_v44 = vld [vmem:[#allocation3 + $0x80] sm:$0xff] }
 0x1eb   : > { %v1754_v37 = vpack.i.bf16 %v988_v44, %v2299_v32  ;;  %v1769_v54 = vpack.i.bf16 %v1013_v50, %v988_v44 }
 0x1ec   : > { %v916_v23 = vmax.f32 %v908_v22, 0.0 }
 0x1ed   : > { %v976_v14 = vld [vmem:[#allocation3 + $0x32] sm:$0xff] }
 0x1ee   : > { %v968_v25 = vld [vmem:[#allocation3 + $0x31] sm:$0xff]  ;;  %952 = vst.msk [vmem:[#allocation3 + $0x41] sm:$0xff] %vm756_vm3, %v916_v23  ;;  %v2287_v26 = vpack.i.bf16 %v976_v14, %v2281_v24 }
 0x1ef   : > { %v2290_v27 = vpack.i.bf16 %v968_v25, %v2283_v15  ;;  %v2306_v36 = vld [vmem:[#allocation3 + $0x30] sm:$0xff] }
 0x1f0   : > { %1690 = vrot.lane.b32.xlu2 %v2287_v26, %s1847_s12  ;;  %v1814_v2 = vpack.i.bf16 %v2306_v36, %v2328_v60 }
 0x1f1   : > { %1685 = vrot.lane.b32.xlu1 %v2290_v27, %s1845_s10 }
 0x1f5   : > { %v977_v29 = vld [vmem:[#allocation3 + $0x42] sm:$0xff] }
 0x1f6   : > { %v1724_v30 = vpack.i.bf16 %v1001_v52, %v977_v29  ;;  %v969_v31 = vld [vmem:[#allocation3 + $0x41] sm:$0xff]  ;;  %v1739_v39 = vpack.i.bf16 %v977_v29, %v976_v14 }
 0x1f7   : > { %v2301_v33 = vld [vmem:[#allocation3 + $0x40] sm:$0xff]  ;;  %v1719_v34 = vpack.i.bf16 %v2262_v17, %v969_v31  ;;  %v1734_v41 = vpack.i.bf16 %v969_v31, %v968_v25  ;;  %v966_v17 = vld [vmem:[#allocation3 + $0x11] sm:$0xff] }
 0x1f8   : > { %1710 = vrot.lane.b32.xlu2 %v1694_v11, %s1853_s30  ;;  %1725 = vrot.lane.b32.xlu0 %v1724_v30, %s1847_s12  ;;  %v1729_v38 = vpack.i.bf16 %v2301_v33, %v2306_v36  ;;  %v1744_v42 = vpack.i.bf16 %v2264_v55, %v2301_v33  ;;  %v965_v52 = vld [vmem:[#allocation3 + $0x1] sm:$0xff]  ;;  %v1804_v0 = vpack.i.bf16 %v2283_v15, %v966_v17 }
 0x1f9   : > { %1700 = vrot.lane.b32.xlu1 %v1714_v19, %s1847_s12  ;;  %v1784_v57 = vpack.i.bf16 %v966_v17, %v965_v52 }
 0x200   : > { %1720 = vrot.lane.b32.xlu2 %v1719_v34, %s1845_s10  ;;  %1730 = vrot.lane.b32.xlu0 %v1729_v38, %s1846_s11 }
 0x201   : > { %1705 = vrot.lane.b32.xlu1 %v1704_v35, %s1854_s8 }
 0x208   : > { %1740 = vrot.lane.b32.xlu2 %v1739_v39, %s1851_s28  ;;  %1745 = vrot.lane.b32.xlu0 %v1744_v42, %s1854_s8 }
 0x209   : > { %1735 = vrot.lane.b32.xlu1 %v1734_v41, %s1850_s15 }
 0x210   : > { %1755 = vrot.lane.b32.xlu2 %v1754_v37, %s1846_s11  ;;  %1760 = vrot.lane.b32.xlu0 %v1759_v48, %s1850_s15 }
 0x211   : > { %1750 = vrot.lane.b32.xlu1 %v1719_v34, %s1853_s30 }
 0x218   : > { %1770 = vrot.lane.b32.xlu2 %v1769_v54, %s1854_s8  ;;  %1780 = vrot.lane.b32.xlu0 %v1779_v43, %s1853_s30 }
 0x219   : > { %1765 = vrot.lane.b32.xlu1 %v1764_v53, %s1851_s28  ;;  %v2347_v3 = vpop.permute.xlu2 %1675 }
 0x21a   : > { %v1678_v14 = vunpack.i.h.bf16 %v2347_v3 }
 0x220   : > { %1775 = vrot.lane.b32.xlu2 %v1724_v30, %s1852_s29  ;;  %1785 = vrot.lane.b32.xlu0 %v1784_v57, %s1845_s10 }
 0x221   : > { %1790 = vrot.lane.b32.xlu1 %v1789_v56, %s1852_s29 }
 0x228   : > { %1800 = vrot.lane.b32.xlu2 %v1799_v63, %s1846_s11  ;;  %1805 = vrot.lane.b32.xlu0 %v1804_v0, %s1850_s15  ;;  %s1464_s15 = sshll.u32 %s2501_s25, 3 }
 0x229   : > { %1795 = vrot.lane.b32.xlu1 %v1794_v62, %s1847_s12  ;;  %s276_s18 = scalar_lea.vmem %s2499_s7, %s1464_s15 }
 0x230   : > { %1815 = vrot.lane.b32.xlu2 %v1814_v2, %s1854_s8  ;;  %1820 = vrot.lane.b32.xlu0 %v2290_v27, %s1853_s30  ;;  %v2349_v20 = vpop.permute.xlu0 %1680  ;;  %v1677_v27 = vunpack.i.l.bf16 %v2347_v3 }
 0x231   : > { %1810 = vrot.lane.b32.xlu1 %v1809_v1, %s1851_s28  ;;  %v1683_v29 = vunpack.i.h.bf16 %v2349_v20  ;;  %v1682_v34 = vunpack.i.l.bf16 %v2349_v20 }
 0x232   : > { %v1671_v6 = vpop.permute.xlu1 %1670 }
 0x233   : > { %v1673_v35 = vunpack.i.h.bf16 %v1671_v6  ;;  %v1672_v41 = vunpack.i.l.bf16 %v1671_v6 }
 0x239   : > { %1825 = vrot.lane.b32.xlu1 %v2287_v26, %s1852_s29 }
 0x24a   : > { %v2351_v4 = vpop.permute.xlu2 %1690 }
 0x24b   : > { %v1693_v42 = vunpack.i.h.bf16 %v2351_v4  ;;  %v1692_v48 = vunpack.i.l.bf16 %v2351_v4 }
 0x251   : > { %v1696_v5 = vpop.permute.xlu0 %1695 }
 0x252   : > { %v2353_v7 = vpop.permute.xlu2 %1710  ;;  %v1697_v15 = vunpack.i.l.bf16 %v1696_v5  ;;  %v1698_v30 = vunpack.i.h.bf16 %v1696_v5 }
 0x253   : > { %v1713_v17 = vunpack.i.h.bf16 %v2353_v7 }
 0x254   : > { %v1292_v49 = vsel %vm756_vm3, %v2266_v47, %v1697_v15  ;;  %v1712_v47 = vunpack.i.l.bf16 %v2353_v7 }
 0x259   : > { %v2357_v9 = vpop.permute.xlu0 %1715 }
 0x25a   : > { %v1721_v10 = vpop.permute.xlu2 %1720  ;;  %v1717_v6 = vunpack.i.l.bf16 %v2357_v9 }
 0x25b   : > { %v1722_v21 = vunpack.i.l.bf16 %v1721_v10  ;;  %v1723_v22 = vunpack.i.h.bf16 %v1721_v10 }
 0x25d   : > { %v1290_v38 = vsel %vm756_vm3, %v2301_v33, %v1722_v21  ;;  %v1291_v44 = vsel %vm756_vm3, %v2264_v55, %v1723_v22  ;;  %v1293_v33 = vsel %vm756_vm3, %v2299_v32, %v1698_v30 }
 0x262   : > { %v2359_v13 = vpop.permute.xlu2 %1740 }
 0x263   : > { %v2355_v8 = vpop.permute.xlu1 %1685 }
 0x264   : > { %v1688_v32 = vunpack.i.h.bf16 %v2355_v8  ;;  %v1687_v63 = vunpack.i.l.bf16 %v2355_v8 }
 0x266   : > { %v1289_v10 = vsel %vm756_vm3, %v2306_v36, %v1688_v32  ;;  %v1288_v21 = vsel %vm756_vm3, %v2328_v60, %v1687_v63 }
 0x26a   : > { %v1726_v12 = vpop.permute.xlu0 %1725  ;;  %v1756_v28 = vpop.permute.xlu2 %1755 }
 0x26b   : > { %v1701_v11 = vpop.permute.xlu1 %1700  ;;  %v1727_v23 = vunpack.i.l.bf16 %v1726_v12  ;;  %v1728_v25 = vunpack.i.h.bf16 %v1726_v12  ;;  %v1758_v53 = vunpack.i.h.bf16 %v1756_v28  ;;  %v1757_v54 = vunpack.i.l.bf16 %v1756_v28 }
 0x26c   : > { %v1702_v31 = vunpack.i.l.bf16 %v1701_v11  ;;  %v1703_v39 = vunpack.i.h.bf16 %v1701_v11 }
 0x26d   : > { %v1298_v58 = vsel %vm774_vm6, %v1290_v38, %v1727_v23  ;;  %v1299_v50 = vsel %vm774_vm6, %v1291_v44, %v1728_v25 }
 0x26e   : > { %v1300_v51 = vsel %vm774_vm6, %v1292_v49, %v1702_v31  ;;  %v1301_v55 = vsel %vm774_vm6, %v1293_v33, %v1703_v39  ;;  %v1306_v43 = vsel %vm792_vm8, %v1298_v58, %v1672_v41  ;;  %v1307_v56 = vsel %vm792_vm8, %v1299_v50, %v1673_v35 }
 0x26f   : > { %v1309_v0 = vsel %vm792_vm8, %v1301_v55, %v1758_v53  ;;  %v1308_v1 = vsel %vm792_vm8, %v1300_v51, %v1757_v54  ;;  %v1314_v2 = vsel %vm810_vm10, %v1306_v43, %v1677_v27  ;;  %v1315_v20 = vsel %vm810_vm10, %v1307_v56, %v1678_v14  ;;  %v1388_v56 = vld [vmem:[%s2497_s5] sm:$0xff] }
 0x270   : > { %v1323_v22 = vsel %vm1318_vm14, %v1314_v2, %v1682_v34  ;;  %v1324_v23 = vsel %vm1318_vm14, %v1315_v20, %v1683_v29  ;;  %v1297_v35 = vsel %vm774_vm6, %v1289_v10, %v1693_v42  ;;  %v1718_v54 = vunpack.i.h.bf16 %v2357_v9 }
 0x271   : > { %v1743_v55 = vunpack.i.h.bf16 %v2359_v13  ;;  %v1742_v43 = vunpack.i.l.bf16 %v2359_v13 }
 0x272   : > { %v2363_v40 = vpop.permute.xlu0 %1730  ;;  %v1771_v37 = vpop.permute.xlu2 %1770 }
 0x273   : > { %v2361_v16 = vpop.permute.xlu1 %1705  ;;  %v1773_v12 = vunpack.i.h.bf16 %v1771_v37  ;;  %v1772_v28 = vunpack.i.l.bf16 %v1771_v37  ;;  %v1733_v14 = vunpack.i.h.bf16 %v2363_v40 }
 0x274   : > { %v1707_v3 = vunpack.i.l.bf16 %v2361_v16  ;;  %v1708_v11 = vunpack.i.h.bf16 %v2361_v16 }
 0x275   : > { %v1305_v44 = vsel %vm792_vm8, %v1297_v35, %v1733_v14 }
 0x276   : > { %v1332_v25 = vsel %vm1327_vm15, %v1323_v22, %v1707_v3  ;;  %v1333_v29 = vsel %vm1327_vm15, %v1324_v23, %v1708_v11  ;;  %v957_v3 = vld [vmem:[#allocation3] sm:$0xff] }
 0x277   : > { %v1341_v33 = vsel %vm1336_vm0, %v1332_v25, %v1712_v47  ;;  %v1395_v47 = vld [vmem:[%s2498_s6] sm:$0xff] }
 0x27a   : > { %v2367_v19 = vpop.permute.xlu0 %1745  ;;  %v2413_v15 = vpop.permute.xlu2 %1775 }
 0x27b   : > { %v2365_v18 = vpop.permute.xlu1 %1735  ;;  %v1747_v2 = vunpack.i.l.bf16 %v2367_v19 }
 0x27c   : > { %v1738_v27 = vunpack.i.h.bf16 %v2365_v18  ;;  %v1737_v60 = vunpack.i.l.bf16 %v2365_v18 }
 0x27e   : > { %v1313_v51 = vsel %vm810_vm10, %v1305_v44, %v1738_v27 }
 0x27f   : > { %v1322_v9 = vsel %vm1318_vm14, %v1313_v51, %v1743_v55 }
 0x282   : > { %v1761_v26 = vpop.permute.xlu0 %1760 }
 0x283   : > { %v2369_v24 = vpop.permute.xlu1 %1750  ;;  %v1763_v45 = vunpack.i.h.bf16 %v1761_v26  ;;  %v1762_v52 = vunpack.i.l.bf16 %v1761_v26  ;;  %v1732_v26 = vunpack.i.l.bf16 %v2363_v40  ;;  %v1296_v40 = vsel %vm774_vm6, %v1288_v21, %v1692_v48 }
 0x284   : > { %v1342_v48 = vsel %vm1336_vm0, %v1333_v29, %v1713_v17  ;;  %v1753_v32 = vunpack.i.h.bf16 %v2369_v24 }
 0x285   : > { %v1316_v4 = vsel %vm810_vm10, %v1308_v1, %v1762_v52  ;;  %v1317_v5 = vsel %vm810_vm10, %v1309_v0, %v1763_v45  ;;  %v1304_v18 = vsel %vm792_vm8, %v1296_v40, %v1732_v26  ;;  %v1350_v52 = vsel %vm1345_vm1, %v1341_v33, %v1717_v6 }
 0x286   : > { %v1312_v42 = vsel %vm810_vm10, %v1304_v18, %v1737_v60  ;;  %v1351_v13 = vsel %vm1345_vm1, %v1342_v48, %v1718_v54  ;;  %v1748_v1 = vunpack.i.h.bf16 %v2367_v19  ;;  %v1778_v19 = vunpack.i.h.bf16 %v2413_v15 }
 0x287   : > { %v1321_v17 = vsel %vm1318_vm14, %v1312_v42, %v1742_v43 }
 0x288   : > { %v1330_v6 = vsel %vm1327_vm15, %v1321_v17, %v1747_v2 }
 0x28a   : > { %v1781_v62 = vpop.permute.xlu0 %1780 }
 0x28b   : > { %v1766_v57 = vpop.permute.xlu1 %1765  ;;  %v1783_v30 = vunpack.i.h.bf16 %v1781_v62  ;;  %v1782_v31 = vunpack.i.l.bf16 %v1781_v62 }
 0x28c   : > { %v1768_v46 = vunpack.i.h.bf16 %v1766_v57  ;;  %v1767_v59 = vunpack.i.l.bf16 %v1766_v57  ;;  %v1855_v57 = vmov 0  }
 0x28d   : > { %1830 = vset.pattern.permute.xlu0 %v1855_v57  ;;  %1829 = vset.pattern.permute.xlu2 %v1855_v57 }
 0x28e   : > { %v1325_v7 = vsel %vm1318_vm14, %v1316_v4, %v1767_v59  ;;  %v1326_v8 = vsel %vm1318_vm14, %v1317_v5, %v1768_v46  ;;  %v1752_v46 = vunpack.i.l.bf16 %v2369_v24  ;;  %v1801_v59 = vpop.permute.xlu2 %1800  ;;  %1398 = vperm.xlu0 %1830, %v1395_v47   ;;  %1391 = vperm.xlu2 %1829, %v1388_v56   ;;  %v1356_v5 = vpack.c.bf16 %v1351_v13, %v1350_v52  ;;  %v1358_v47 = vld [vmem:[%s2496_s4] sm:$0xf] }
 0x28f   : > { %v1334_v36 = vsel %vm1327_vm15, %v1325_v7, %v1772_v28  ;;  %v1335_v16 = vsel %vm1327_vm15, %v1326_v8, %v1773_v12  ;;  %v1331_v7 = vsel %vm1327_vm15, %v1322_v9, %v1748_v1  ;;  %v1777_v28 = vunpack.i.l.bf16 %v2413_v15 }
 0x290   : > { %v1343_v58 = vsel %vm1336_vm0, %v1334_v36, %v1782_v31  ;;  %v1344_v37 = vsel %vm1336_vm0, %v1335_v16, %v1783_v30  ;;  %v1339_v11 = vsel %vm1336_vm0, %v1330_v6, %v1752_v46  ;;  %v1340_v12 = vsel %vm1336_vm0, %v1331_v7, %v1753_v32 }
 0x291   : > { %v1803_v23 = vunpack.i.h.bf16 %v1801_v59  ;;  %v1802_v14 = vunpack.i.l.bf16 %v1801_v59  ;;  %v1370_v25 = vsel %vm1359_vm2, %v1356_v5, 0  ;;  %v1349_v26 = vsel %vm1345_vm1, %v1340_v12, %v1778_v19 }
 0x292   : > { %v1786_v41 = vpop.permute.xlu0 %1785 }
 0x293   : > { %v1791_v34 = vpop.permute.xlu1 %1790  ;;  %v1788_v62 = vunpack.i.h.bf16 %v1786_v41  ;;  %v1787_v63 = vunpack.i.l.bf16 %v1786_v41 }
 0x294   : > { %v1793_v38 = vunpack.i.h.bf16 %v1791_v34  ;;  %v1792_v39 = vunpack.i.l.bf16 %v1791_v34 }
 0x295   : > { %v1287_v8 = vsel %vm756_vm3, %v2330_v61, %v1788_v62  ;;  %v1286_v10 = vsel %vm756_vm3, %v957_v3, %v1787_v63  ;;  %v1348_v61 = vsel %vm1345_vm1, %v1339_v11, %v1777_v28 }
 0x296   : > { %v1352_v49 = vsel %vm1345_vm1, %v1343_v58, %v1792_v39  ;;  %v1353_v50 = vsel %vm1345_vm1, %v1344_v37, %v1793_v38  ;;  %v1816_v34 = vpop.permute.xlu2 %1815  ;;  %v1355_v29 = vpack.c.bf16 %v1349_v26, %v1348_v61 }
 0x297   : > { %v1357_v53 = vpack.c.bf16 %v1353_v50, %v1352_v49  ;;  %v1818_v40 = vunpack.i.h.bf16 %v1816_v34  ;;  %v1817_v44 = vunpack.i.l.bf16 %v1816_v34 }
 0x298   : > { %v1367_v37 = vsel %vm1359_vm2, %v1355_v29, 0 }
 0x299   : > { %v1373_v45 = vsel %vm1359_vm2, %v1357_v53, 0 }
 0x29a   : > { %1379 = vmatpush.bf16.xpose.msra.mxu1 %v1373_v45  ;;  %v1806_v24 = vpop.permute.xlu0 %1805 }
 0x29b   : > { %v1796_v0 = vpop.permute.xlu1 %1795  ;;  %v1808_v60 = vunpack.i.h.bf16 %v1806_v24  ;;  %v1807_v15 = vunpack.i.l.bf16 %v1806_v24 }
 0x29c   : > { %v1798_v20 = vunpack.i.h.bf16 %v1796_v0  ;;  %v1797_v4 = vunpack.i.l.bf16 %v1796_v0 }
 0x29e   : > { %v1294_v21 = vsel %vm774_vm6, %v1286_v10, %v1797_v4  ;;  %v1295_v22 = vsel %vm774_vm6, %v1287_v8, %v1798_v20 }
 0x29f   : > { %v1302_v36 = vsel %vm792_vm8, %v1294_v21, %v1802_v14  ;;  %v1303_v16 = vsel %vm792_vm8, %v1295_v22, %v1803_v23 }
 0x2a0   : > { %v1310_v35 = vsel %vm810_vm10, %v1302_v36, %v1807_v15  ;;  %v1311_v38 = vsel %vm810_vm10, %v1303_v16, %v1808_v60 }
 0x2a2   : > { %1380 = vmatpush.bf16.xpose.msra.mxu1 %v1370_v25  ;;  %v1821_v58 = vpop.permute.xlu0 %1820 }
 0x2a3   : > { %v1811_v27 = vpop.permute.xlu1 %1810  ;;  %v1823_v50 = vunpack.i.h.bf16 %v1821_v58  ;;  %v1822_v33 = vunpack.i.l.bf16 %v1821_v58 }
 0x2a4   : > { %v1813_v30 = vunpack.i.h.bf16 %v1811_v27  ;;  %v1812_v31 = vunpack.i.l.bf16 %v1811_v27 }
 0x2a6   : > { %v1319_v39 = vsel %vm1318_vm14, %v1310_v35, %v1812_v31  ;;  %v1320_v41 = vsel %vm1318_vm14, %v1311_v38, %v1813_v30 }
 0x2a7   : > { %v1328_v18 = vsel %vm1327_vm15, %v1319_v39, %v1817_v44  ;;  %v1329_v49 = vsel %vm1327_vm15, %v1320_v41, %v1818_v40 }
 0x2a8   : > { %v1337_v48 = vsel %vm1336_vm0, %v1328_v18, %v1822_v33  ;;  %v1338_v54 = vsel %vm1336_vm0, %v1329_v49, %v1823_v50 }
 0x2aa   : > { %1381 = vmatpush.bf16.xpose.msra.mxu1 %v1367_v37 }
 0x2ab   : > { %v1826_v42 = vpop.permute.xlu1 %1825 }
 0x2ac   : > { %v1828_v51 = vunpack.i.h.bf16 %v1826_v42  ;;  %v1827_v53 = vunpack.i.l.bf16 %v1826_v42 }
 0x2ae   : > { %v1346_v55 = vsel %vm1345_vm1, %v1337_v48, %v1827_v53  ;;  %v1347_v43 = vsel %vm1345_vm1, %v1338_v54, %v1828_v51 }
 0x2af   : > { %v1354_v45 = vpack.c.bf16 %v1347_v43, %v1346_v55 }
 0x2b1   : > { %v1364_v52 = vsel %vm1359_vm2, %v1354_v45, 0 }
 0x2b2   : > { %1382 = vmatpush.bf16.xpose.msra.mxu1 %v1364_v52 }
 0x2b9   : > { %1477 = vmatmul.msk.bf16.vlgmr.msra.gmra.mxu1 %vm1359_vm2, %v1358_v47 }
 0x2e8   : > { %v1392_v56 = vpop.permute.xlu2 %1391 }
 0x300   : > { %v1399_v9 = vpop.permute.xlu0 %1398 }
 0x336   : > { %v1384_v17 = vpop.f32.mrf.mxu1 }
 0x337   : > { %v1394_v13 = vmul.f32 %v1392_v56, %v1384_v17 }
 0x339   : > { %v1401_v57 = vadd.f32 %v1399_v9, %v1394_v13 }
 0x33b   : > { %v1402_v32 = vmax.f32 %v1401_v57, 0.0 }
 0x33d   : > { %1403 = vst.msk [vmem:[%s276_s18] sm:$0xff] %vm1345_vm1, %v1402_v32 }
 0x33e   : > { %v1386_v46 = vpop.f32.mrf.mxu1 }
 0x33f PF: > { %s17_s24 = sadd.s32 1, %s1839_s24  }
 0x340   : > { %p14_p4 = scmp.ge.s32.totalorder %s17_s24, 4  }
 0x342   :  { %16 = sbr.rel (!%p14_p4) target bundleno = 1 (0x1), region = 84 }

</bundles_post_ra>
